<compile_context>
chip_gen: v7x
topology: tpu7x:2x2x1
jax: 0.10.0
libtpu: 0.0.40
codegen_flags: <defaults>
</compile_context>

<pallas_src>
import functools

import jax
import jax.numpy as jnp
from jax.experimental import pallas as pl
from jax.experimental.pallas import tpu as pltpu


def _round_up(x, m):
    return ((x + m - 1) // m) * m


def _attn_pool_kernel(x_ref, pos_ref, wqkv_ref, bqkv_ref, hsum_ref, hexp_ref,
                      wc_ref, bc_ref, o_ref, t_scr, *, num_heads, seq_len):
    """One grid step = one block of B batch elements.

    x_ref   : (B, P, C) f32 patch tokens
    pos_ref : (L, C)    f32 positional embedding, L = P + 1
    wqkv_ref: (C, 3C)   bf16 fused [Wq*scale | Wk | Wv] (in, out layout)
    bqkv_ref: (1, 3C)   f32 fused [bq*scale | bk | bv]
    hsum_ref: (C, H)    f32 0/1 head-membership matrix
    hexp_ref: (H, C)    f32 transpose of hsum
    wc_ref  : (C, D)    bf16 output projection
    bc_ref  : (1, D)    f32
    o_ref   : (B, D)    f32 output slab
    t_scr   : (B, L_pad, C) f32 scratch (padded token tensor)
    """
    B, P, C = x_ref.shape
    L_pad = t_scr.shape[1]
    L = seq_len                                       # valid tokens = P + 1

    x = x_ref[...]                                    # (B, P, C) f32
    cls = jnp.mean(x, axis=1, keepdims=True)          # (B, 1, C) mean-pool token

    # Padded token tensor [cls ; patches ; zeros] + positional embedding.
    # Direct aligned stores into scratch; no jnp.concatenate.
    t_scr[:, 0:1, :] = cls + pos_ref[0:1, :]
    t_scr[:, 1:P + 1, :] = x + pos_ref[1:, :]
    if L_pad > L:                                     # static
        t_scr[:, L:, :] = jnp.zeros((B, L_pad - L, C), dtype=t_scr.dtype)

    # Fused QKV projection: one big MXU matmul, bf16 inputs, f32 accumulation.
    t2d = t_scr[...].astype(jnp.bfloat16).reshape(B * L_pad, C)
    qkv = jnp.dot(t2d, wqkv_ref[...],
                  preferred_element_type=jnp.float32) + bqkv_ref[...]
    qkv = qkv.reshape(B, L_pad, 3 * C)
    q = qkv[:, 0:1, 0:C]              # only the CLS query is used (scale folded in)
    k = qkv[:, :, C:2 * C]            # (B, L_pad, C)
    v = qkv[:, :, 2 * C:3 * C]        # (B, L_pad, C)

    # Per-head scores: elementwise q*k (VPU) then per-head reduction via a
    # single (C, H) 0/1 matmul -> s[b, l, h].
    e = q * k                                         # (B, L_pad, C) f32
    s = jnp.dot(e.reshape(B * L_pad, C), hsum_ref[...],
                preferred_element_type=jnp.float32)
    s = s.reshape(B, L_pad, num_heads)

    # Mask padded key rows, softmax over the key axis (axis=1).
    l_idx = jax.lax.broadcasted_iota(jnp.int32, (B, L_pad, num_heads), 1)
    s = jnp.where(l_idx < L, s, -1e30)
    s = s - jnp.max(s, axis=1, keepdims=True)
    p = jnp.exp(s)
    p = p * pl.reciprocal(jnp.sum(p, axis=1, keepdims=True), approx=True)

    # Expand head weights back to channels ((H, C) 0/1 matmul), weight v, and
    # reduce over keys.
    p_c = jnp.dot(p.reshape(B * L_pad, num_heads), hexp_ref[...],
                  preferred_element_type=jnp.float32).reshape(B, L_pad, C)
    attn = jnp.sum(p_c * v, axis=1)                   # (B, C) f32

    # Output projection (c_proj), bf16 weights, f32 accumulation.
    out = jnp.dot(attn.astype(jnp.bfloat16), wc_ref[...],
                  preferred_element_type=jnp.float32) + bc_ref[...]
    o_ref[...] = out.astype(o_ref.dtype)


def attention_pool_2d(x, params, num_heads, *, batch_block=8):
    """x: (N, C, H, W) float32.  Returns (N, output_dim) float32."""
    N, C, H, W = x.shape
    P = H * W
    L = P + 1
    L_pad = _round_up(L, 8)
    D = params["wc"].shape[0]
    assert C % num_heads == 0
    head_dim = C // num_heads
    scale = head_dim ** -0.5

    # Glue: NCHW -> (N, P, C) token layout.
    # TODO(synk): at real CLIP sizes fuse this transpose into the pallas_call
    # (allow_input_fusion) or contract over C in-kernel to avoid the extra HBM pass.
    x_tok = jnp.transpose(x.reshape(N, C, P), (0, 2, 1)).astype(jnp.float32)

    # Batch-block the grid (pad N up to a multiple of the block).
    B_blk = max(1, min(batch_block, N))
    N_pad = _round_up(N, B_blk)
    if N_pad != N:
        x_tok = jnp.pad(x_tok, ((0, N_pad - N), (0, 0), (0, 0)))

    # Fused QKV weight/bias in (in, out) layout, scale folded into Wq/bq,
    # bf16 weights (f32 accumulation happens in the kernel).
    wqkv = jnp.concatenate(
        [params["wq"].T * scale, params["wk"].T, params["wv"].T],
        axis=1).astype(jnp.bfloat16)                             # (C, 3C)
    bqkv = jnp.concatenate(
        [params["bq"] * scale, params["bk"], params["bv"]]
    ).reshape(1, 3 * C).astype(jnp.float32)
    wc = params["wc"].T.astype(jnp.bfloat16)                     # (C, D)
    bc = params["bc"].reshape(1, D).astype(jnp.float32)
    pos = params["pos"].astype(jnp.float32)                      # (L, C)

    # 0/1 head-membership matrices for the head-sum / head-expand matmuls.
    head_of_c = jnp.arange(C) // head_dim
    hsum = (head_of_c[:, None] == jnp.arange(num_heads)[None, :]).astype(jnp.float32)
    hexp = hsum.T

    kernel = functools.partial(_attn_pool_kernel, num_heads=num_heads, seq_len=L)

    out = pl.pallas_call(
        kernel,
        out_shape=jax.ShapeDtypeStruct((N_pad, D), jnp.float32),
        grid_spec=pltpu.PrefetchScalarGridSpec(
            num_scalar_prefetch=0,
            grid=(N_pad // B_blk,),
            in_specs=[
                pl.BlockSpec((B_blk, P, C), lambda n: (n, 0, 0)),   # tokens
                pl.BlockSpec((L, C), lambda n: (0, 0)),             # pos embed
                pl.BlockSpec((C, 3 * C), lambda n: (0, 0)),         # fused Wqkv
                pl.BlockSpec((1, 3 * C), lambda n: (0, 0)),         # fused bias
                pl.BlockSpec((C, num_heads), lambda n: (0, 0)),     # head-sum
                pl.BlockSpec((num_heads, C), lambda n: (0, 0)),     # head-expand
                pl.BlockSpec((C, D), lambda n: (0, 0)),             # Wc
                pl.BlockSpec((1, D), lambda n: (0, 0)),             # bc
            ],
            out_specs=pl.BlockSpec((B_blk, D), lambda n: (n, 0)),
            scratch_shapes=[pltpu.VMEM((B_blk, L_pad, C), jnp.float32)],
        ),
        compiler_params=pltpu.CompilerParams(
            dimension_semantics=("parallel",),
            vmem_limit_bytes=32 * 1024 * 1024),
    )(x_tok, pos, wqkv, bqkv, hsum, hexp, wc, bc)

    return out[:N]                                               # (N, D)


def reference_attention_pool_2d(x, params, num_heads):
    """Pure-JAX (f32) reproduction of the PyTorch forward (for verification)."""
    N, C, H, W = x.shape
    t = jnp.transpose(x.reshape(N, C, H * W), (2, 0, 1))          # (P, N, C)
    t = jnp.concatenate([t.mean(axis=0, keepdims=True), t], 0)    # (L, N, C)
    t = t + params["pos"][:, None, :]
    L = t.shape[0]
    hd = C // num_heads
    scale = hd ** -0.5

    q = t[:1] @ params["wq"].T + params["bq"]                     # (1, N, C)
    k = t @ params["wk"].T + params["bk"]                         # (L, N, C)
    v = t @ params["wv"].T + params["bv"]

    qh = (q * scale).reshape(1, N, num_heads, hd).transpose(1, 2, 0, 3)
    kh = k.reshape(L, N, num_heads, hd).transpose(1, 2, 0, 3)
    vh = v.reshape(L, N, num_heads, hd).transpose(1, 2, 0, 3)
    s = jnp.einsum('nhqd,nhkd->nhqk', qh, kh)
    p = jax.nn.softmax(s, axis=-1)
    o = jnp.einsum('nhqk,nhkd->nhqd', p, vh)                      # (N, H, 1, hd)
    o = o.transpose(2, 0, 1, 3).reshape(1, N, C)
    out = o @ params["wc"].T + params["bc"]                       # (1, N, D)
    return out[0]


if __name__ == "__main__":
    # Small, deterministic configuration.
    spacial_dim = 4          # H = W = 4  -> P = 16 patch tokens, L = 17
    embed_dim = 32           # C
    num_heads = 4
    output_dim = 16
    batch = 16               # 2 grid steps with batch_block=8

    key = jax.random.PRNGKey(0)
    ks = jax.random.split(key, 11)
    L = spacial_dim ** 2 + 1

    params = {
        "pos": (jax.random.normal(ks[0], (L, embed_dim), jnp.float32)
                / embed_dim ** 0.5),
        # nn.Linear convention: weight (out_features, in_features), bias (out,)
        "wq": 0.05 * jax.random.normal(ks[1], (embed_dim, embed_dim), jnp.float32),
        "bq": 0.05 * jax.random.normal(ks[2], (embed_dim,), jnp.float32),
        "wk": 0.05 * jax.random.normal(ks[3], (embed_dim, embed_dim), jnp.float32),
        "bk": 0.05 * jax.random.normal(ks[4], (embed_dim,), jnp.float32),
        "wv": 0.05 * jax.random.normal(ks[5], (embed_dim, embed_dim), jnp.float32),
        "bv": 0.05 * jax.random.normal(ks[6], (embed_dim,), jnp.float32),
        "wc": 0.05 * jax.random.normal(ks[7], (output_dim, embed_dim), jnp.float32),
        "bc": 0.05 * jax.random.normal(ks[8], (output_dim,), jnp.float32),
    }

    x = jax.random.normal(ks[9], (batch, embed_dim, spacial_dim, spacial_dim),
                          jnp.float32)

    out = attention_pool_2d(x, params, num_heads, batch_block=8)
    out = jax.block_until_ready(out)

    ref = reference_attention_pool_2d(x, params, num_heads)
    assert out.shape == (batch, output_dim), out.shape
    # bf16 matmul inputs (f32 accumulation) -> loosened tolerance vs f32 reference.
    assert jnp.allclose(out, ref, rtol=2e-2, atol=2e-2), (
        float(jnp.max(jnp.abs(out - ref))))

    print("KERNEL_OK")
</pallas_src>

<mosaic_0001>
module attributes {stable_mosaic.version = 11 : i64} {
  func.func @_attn_pool_kernel(%arg0: i32, %arg1: memref<8x16x32xf32, #tpu.memory_space<vmem>>, %arg2: memref<17x32xf32, #tpu.memory_space<vmem>>, %arg3: memref<32x96xbf16, #tpu.memory_space<vmem>>, %arg4: memref<1x96xf32, #tpu.memory_space<vmem>>, %arg5: memref<32x4xf32, #tpu.memory_space<vmem>>, %arg6: memref<4x32xf32, #tpu.memory_space<vmem>>, %arg7: memref<32x16xbf16, #tpu.memory_space<vmem>>, %arg8: memref<1x16xf32, #tpu.memory_space<vmem>>, %arg9: memref<8x16xf32, #tpu.memory_space<vmem>>, %arg10: memref<8x24x32xf32, #tpu.memory_space<vmem>>) attributes {dimension_semantics = [#tpu.dimension_semantics<parallel>], iteration_bounds = array<i64: 2>, scalar_prefetch = 0 : i64, scratch_operands = 1 : i64, tpu.core_type = #tpu.core_type<tc>, window_params = [{transform_indices = @transform_0, window_bounds = array<i64: 8, 16, 32>}, {pipeline_mode = #tpu.pipeline_mode<synchronous>, transform_indices = @transform_1, window_bounds = array<i64: 17, 32>}, {pipeline_mode = #tpu.pipeline_mode<synchronous>, transform_indices = @transform_2, window_bounds = array<i64: 32, 96>}, {pipeline_mode = #tpu.pipeline_mode<synchronous>, transform_indices = @transform_3, window_bounds = array<i64: 1, 96>}, {pipeline_mode = #tpu.pipeline_mode<synchronous>, transform_indices = @transform_4, window_bounds = array<i64: 32, 4>}, {pipeline_mode = #tpu.pipeline_mode<synchronous>, transform_indices = @transform_5, window_bounds = array<i64: 4, 32>}, {pipeline_mode = #tpu.pipeline_mode<synchronous>, transform_indices = @transform_6, window_bounds = array<i64: 32, 16>}, {pipeline_mode = #tpu.pipeline_mode<synchronous>, transform_indices = @transform_7, window_bounds = array<i64: 1, 16>}, {transform_indices = @transform_8, window_bounds = array<i64: 8, 16>}]} {
    %c0 = arith.constant 0 : index
    %c0_0 = arith.constant 0 : index
    %c0_1 = arith.constant 0 : index
    %0 = vector.load %arg1[%c0, %c0_0, %c0_1] : memref<8x16x32xf32, #tpu.memory_space<vmem>>, vector<8x16x32xf32>
    %cst = arith.constant dense<0.000000e+00> : vector<8x32xf32>
    %1 = vector.multi_reduction <add>, %0, %cst [1] : vector<8x16x32xf32> to vector<8x32xf32>
    %2 = vector.shape_cast %1 : vector<8x32xf32> to vector<8x1x32xf32>
    %cst_2 = arith.constant 1.600000e+01 : f32
    %3 = vector.broadcast %cst_2 : f32 to vector<8x1x32xf32>
    %4 = arith.divf %2, %3 : vector<8x1x32xf32>
    %c0_3 = arith.constant 0 : index
    %c0_4 = arith.constant 0 : index
    %5 = vector.load %arg2[%c0_3, %c0_4] : memref<17x32xf32, #tpu.memory_space<vmem>>, vector<1x32xf32>
    %6 = vector.shape_cast %5 : vector<1x32xf32> to vector<1x1x32xf32>
    %7 = vector.broadcast %6 : vector<1x1x32xf32> to vector<8x1x32xf32>
    %8 = arith.addf %4, %7 : vector<8x1x32xf32>
    %c0_5 = arith.constant 0 : index
    %c0_6 = arith.constant 0 : index
    %c0_7 = arith.constant 0 : index
    %9 = vector.load %arg10[%c0_5, %c0_6, %c0_7] : memref<8x24x32xf32, #tpu.memory_space<vmem>>, vector<8x1x32xf32>
    tpu.vector_store %arg10[%c0_5, %c0_6, %c0_7], %8 {strides = array<i32>} : memref<8x24x32xf32, #tpu.memory_space<vmem>>, vector<8x1x32xf32>,
    %c1 = arith.constant 1 : index
    %c0_8 = arith.constant 0 : index
    %10 = vector.load %arg2[%c1, %c0_8] : memref<17x32xf32, #tpu.memory_space<vmem>>, vector<16x32xf32>
    %11 = vector.shape_cast %10 : vector<16x32xf32> to vector<1x16x32xf32>
    %12 = vector.broadcast %11 : vector<1x16x32xf32> to vector<8x16x32xf32>
    %13 = arith.addf %0, %12 : vector<8x16x32xf32>
    %c0_9 = arith.constant 0 : index
    %c1_10 = arith.constant 1 : index
    %c0_11 = arith.constant 0 : index
    %14 = vector.load %arg10[%c0_9, %c1_10, %c0_11] : memref<8x24x32xf32, #tpu.memory_space<vmem>>, vector<8x16x32xf32>
    tpu.vector_store %arg10[%c0_9, %c1_10, %c0_11], %13 {strides = array<i32>} : memref<8x24x32xf32, #tpu.memory_space<vmem>>, vector<8x16x32xf32>,
    %cst_12 = arith.constant 0.000000e+00 : f32
    %15 = vector.broadcast %cst_12 : f32 to vector<8x7x32xf32>
    %c0_13 = arith.constant 0 : index
    %c17 = arith.constant 17 : index
    %c0_14 = arith.constant 0 : index
    %16 = vector.load %arg10[%c0_13, %c17, %c0_14] : memref<8x24x32xf32, #tpu.memory_space<vmem>>, vector<8x7x32xf32>
    tpu.vector_store %arg10[%c0_13, %c17, %c0_14], %15 {strides = array<i32>} : memref<8x24x32xf32, #tpu.memory_space<vmem>>, vector<8x7x32xf32>,
    %c0_15 = arith.constant 0 : index
    %c0_16 = arith.constant 0 : index
    %c0_17 = arith.constant 0 : index
    %17 = vector.load %arg10[%c0_15, %c0_16, %c0_17] : memref<8x24x32xf32, #tpu.memory_space<vmem>>, vector<8x24x32xf32>
    %18 = arith.truncf %17 : vector<8x24x32xf32> to vector<8x24x32xbf16>
    %19 = vector.shape_cast %18 : vector<8x24x32xbf16> to vector<192x32xbf16>
    %c0_18 = arith.constant 0 : index
    %c0_19 = arith.constant 0 : index
    %20 = vector.load %arg3[%c0_18, %c0_19] : memref<32x96xbf16, #tpu.memory_space<vmem>>, vector<32x96xbf16>
    %cst_20 = arith.constant dense<0.000000e+00> : vector<192x96xf32>
    %21 = tpu.matmul %19, %20, %cst_20 {dimension_numbers = #tpu.dot_dimension_numbers<[1], [0], [0], [1], [0, 0, 1, 1], [], []>} : vector<192x32xbf16>, vector<32x96xbf16>, vector<192x96xf32> -> vector<192x96xf32>
    %c0_21 = arith.constant 0 : index
    %c0_22 = arith.constant 0 : index
    %22 = vector.load %arg4[%c0_21, %c0_22] : memref<1x96xf32, #tpu.memory_space<vmem>>, vector<1x96xf32>
    %23 = vector.broadcast %22 : vector<1x96xf32> to vector<192x96xf32>
    %24 = arith.addf %21, %23 : vector<192x96xf32>
    %25 = vector.shape_cast %24 : vector<192x96xf32> to vector<8x24x96xf32>
    %26 = vector.extract_strided_slice %25 {offsets = [0, 0, 0], sizes = [8, 1, 32], strides = [1, 1, 1]} : vector<8x24x96xf32> to vector<8x1x32xf32>
    %27 = vector.extract_strided_slice %25 {offsets = [0, 0, 32], sizes = [8, 24, 32], strides = [1, 1, 1]} : vector<8x24x96xf32> to vector<8x24x32xf32>
    %28 = vector.extract_strided_slice %25 {offsets = [0, 0, 64], sizes = [8, 24, 32], strides = [1, 1, 1]} : vector<8x24x96xf32> to vector<8x24x32xf32>
    %29 = vector.broadcast %26 : vector<8x1x32xf32> to vector<8x24x32xf32>
    %30 = arith.mulf %29, %27 : vector<8x24x32xf32>
    %31 = vector.shape_cast %30 : vector<8x24x32xf32> to vector<192x32xf32>
    %c0_23 = arith.constant 0 : index
    %c0_24 = arith.constant 0 : index
    %32 = vector.load %arg5[%c0_23, %c0_24] : memref<32x4xf32, #tpu.memory_space<vmem>>, vector<32x4xf32>
    %cst_25 = arith.constant dense<0.000000e+00> : vector<192x4xf32>
    %33 = tpu.matmul %31, %32, %cst_25 {dimension_numbers = #tpu.dot_dimension_numbers<[1], [0], [0], [1], [0, 0, 1, 1], [], []>} : vector<192x32xf32>, vector<32x4xf32>, vector<192x4xf32> -> vector<192x4xf32>
    %34 = vector.shape_cast %33 : vector<192x4xf32> to vector<8x24x4xf32>
    %35 = tpu.iota {dimensions = array<i32: 1>} : vector<8x24x4xi32>
    %c17_i32 = arith.constant 17 : i32
    %36 = vector.broadcast %c17_i32 : i32 to vector<8x24x4xi32>
    %37 = arith.cmpi slt, %35, %36 : vector<8x24x4xi32>
    %cst_26 = arith.constant -1.000000e+30 : f32
    %38 = vector.broadcast %cst_26 : f32 to vector<8x24x4xf32>
    %39 = arith.select %37, %34, %38 : vector<8x24x4xi1>, vector<8x24x4xf32>
    %cst_27 = arith.constant dense<0xFF800000> : vector<8x4xf32>
    %40 = vector.multi_reduction <maximumf>, %39, %cst_27 [1] : vector<8x24x4xf32> to vector<8x4xf32>
    %41 = vector.shape_cast %40 : vector<8x4xf32> to vector<8x1x4xf32>
    %42 = vector.broadcast %41 : vector<8x1x4xf32> to vector<8x24x4xf32>
    %43 = arith.subf %39, %42 : vector<8x24x4xf32>
    %44 = math.exp %43 : vector<8x24x4xf32>
    %cst_28 = arith.constant dense<0.000000e+00> : vector<8x4xf32>
    %45 = vector.multi_reduction <add>, %44, %cst_28 [1] : vector<8x24x4xf32> to vector<8x4xf32>
    %46 = vector.shape_cast %45 : vector<8x4xf32> to vector<8x1x4xf32>
    %47 = tpu.reciprocal %46 {approx = true} : vector<8x1x4xf32> -> vector<8x1x4xf32>
    %48 = vector.broadcast %47 : vector<8x1x4xf32> to vector<8x24x4xf32>
    %49 = arith.mulf %44, %48 : vector<8x24x4xf32>
    %50 = vector.shape_cast %49 : vector<8x24x4xf32> to vector<192x4xf32>
    %c0_29 = arith.constant 0 : index
    %c0_30 = arith.constant 0 : index
    %51 = vector.load %arg6[%c0_29, %c0_30] : memref<4x32xf32, #tpu.memory_space<vmem>>, vector<4x32xf32>
    %cst_31 = arith.constant dense<0.000000e+00> : vector<192x32xf32>
    %52 = tpu.matmul %50, %51, %cst_31 {dimension_numbers = #tpu.dot_dimension_numbers<[1], [0], [0], [1], [0, 0, 1, 1], [], []>} : vector<192x4xf32>, vector<4x32xf32>, vector<192x32xf32> -> vector<192x32xf32>
    %53 = vector.shape_cast %52 : vector<192x32xf32> to vector<8x24x32xf32>
    %54 = arith.mulf %53, %28 : vector<8x24x32xf32>
    %cst_32 = arith.constant dense<0.000000e+00> : vector<8x32xf32>
    %55 = vector.multi_reduction <add>, %54, %cst_32 [1] : vector<8x24x32xf32> to vector<8x32xf32>
    %56 = arith.truncf %55 : vector<8x32xf32> to vector<8x32xbf16>
    %c0_33 = arith.constant 0 : index
    %c0_34 = arith.constant 0 : index
    %57 = vector.load %arg7[%c0_33, %c0_34] : memref<32x16xbf16, #tpu.memory_space<vmem>>, vector<32x16xbf16>
    %cst_35 = arith.constant dense<0.000000e+00> : vector<8x16xf32>
    %58 = tpu.matmul %56, %57, %cst_35 {dimension_numbers = #tpu.dot_dimension_numbers<[1], [0], [0], [1], [0, 0, 1, 1], [], []>} : vector<8x32xbf16>, vector<32x16xbf16>, vector<8x16xf32> -> vector<8x16xf32>
    %c0_36 = arith.constant 0 : index
    %c0_37 = arith.constant 0 : index
    %59 = vector.load %arg8[%c0_36, %c0_37] : memref<1x16xf32, #tpu.memory_space<vmem>>, vector<1x16xf32>
    %60 = vector.broadcast %59 : vector<1x16xf32> to vector<8x16xf32>
    %61 = arith.addf %58, %60 : vector<8x16xf32>
    %c0_38 = arith.constant 0 : index
    %c0_39 = arith.constant 0 : index
    %62 = vector.load %arg9[%c0_38, %c0_39] : memref<8x16xf32, #tpu.memory_space<vmem>>, vector<8x16xf32>
    tpu.vector_store %arg9[%c0_38, %c0_39], %61 {strides = array<i32>} : memref<8x16xf32, #tpu.memory_space<vmem>>, vector<8x16xf32>,
    return
  }
  func.func @transform_0(%arg0: i32) -> (i32, i32, i32) {
    %c0_i32 = arith.constant 0 : i32
    %c0_i32_0 = arith.constant 0 : i32
    %c0_i32_1 = arith.constant 0 : i32
    return %arg0, %c0_i32, %c0_i32_0 : i32, i32, i32
  }
  func.func @transform_1(%arg0: i32) -> (i32, i32) {
    %c0_i32 = arith.constant 0 : i32
    %c0_i32_0 = arith.constant 0 : i32
    %c0_i32_1 = arith.constant 0 : i32
    return %c0_i32, %c0_i32_0 : i32, i32
  }
  func.func @transform_2(%arg0: i32) -> (i32, i32) {
    %c0_i32 = arith.constant 0 : i32
    %c0_i32_0 = arith.constant 0 : i32
    %c0_i32_1 = arith.constant 0 : i32
    return %c0_i32, %c0_i32_0 : i32, i32
  }
  func.func @transform_3(%arg0: i32) -> (i32, i32) {
    %c0_i32 = arith.constant 0 : i32
    %c0_i32_0 = arith.constant 0 : i32
    %c0_i32_1 = arith.constant 0 : i32
    return %c0_i32, %c0_i32_0 : i32, i32
  }
  func.func @transform_4(%arg0: i32) -> (i32, i32) {
    %c0_i32 = arith.constant 0 : i32
    %c0_i32_0 = arith.constant 0 : i32
    %c0_i32_1 = arith.constant 0 : i32
    return %c0_i32, %c0_i32_0 : i32, i32
  }
  func.func @transform_5(%arg0: i32) -> (i32, i32) {
    %c0_i32 = arith.constant 0 : i32
    %c0_i32_0 = arith.constant 0 : i32
    %c0_i32_1 = arith.constant 0 : i32
    return %c0_i32, %c0_i32_0 : i32, i32
  }
  func.func @transform_6(%arg0: i32) -> (i32, i32) {
    %c0_i32 = arith.constant 0 : i32
    %c0_i32_0 = arith.constant 0 : i32
    %c0_i32_1 = arith.constant 0 : i32
    return %c0_i32, %c0_i32_0 : i32, i32
  }
  func.func @transform_7(%arg0: i32) -> (i32, i32) {
    %c0_i32 = arith.constant 0 : i32
    %c0_i32_0 = arith.constant 0 : i32
    %c0_i32_1 = arith.constant 0 : i32
    return %c0_i32, %c0_i32_0 : i32, i32
  }
  func.func @transform_8(%arg0: i32) -> (i32, i32) {
    %c0_i32 = arith.constant 0 : i32
    %c0_i32_0 = arith.constant 0 : i32
    return %arg0, %c0_i32 : i32, i32
  }
}

</mosaic_0001>

<bundles_post_ra>
// kernel: tpu_custom_call.1
= control target key start
LH: loop header
LB: loop body
LE: loop exit
PB: predicated region body
PF: predicated region fallthrough
CT: control target
= control target key end

     0   :  { %13 = vsyncpa [#allocation4], 0  ;;  %s3412_s0 = inlined_call_operand.hbm [shape: f32[16,16,32], index: 0, kind: input, shape index: {}]   ;;  %s3413_s1 = inlined_call_operand.vmem [shape: f32[17,32], index: 1, kind: input, shape index: {}]   ;;  %s3414_s2 = inlined_call_operand.vmem [shape: bf16[32,96], index: 2, kind: input, shape index: {}]   ;;  %s3415_s3 = inlined_call_operand.vmem [shape: f32[1,96], index: 3, kind: input, shape index: {}]   ;;  %s3416_s4 = inlined_call_operand.vmem [shape: f32[32,4], index: 4, kind: input, shape index: {}]   ;;  %s3417_s5 = inlined_call_operand.vmem [shape: f32[4,32], index: 5, kind: input, shape index: {}]   ;;  %s3418_s6 = inlined_call_operand.vmem [shape: bf16[32,16], index: 6, kind: input, shape index: {}]   ;;  %s3419_s7 = inlined_call_operand.vmem [shape: f32[1,16], index: 7, kind: input, shape index: {}]   ;;  %s3420_s8 = inlined_call_operand.hbm [shape: f32[16,16], index: 8, kind: output, shape index: {}]  }
   0x1   :  { %15 = vsyncpa [#allocation4 + $0x1], 0 }
   0x2   :  { %16 = vsyncpa [#allocation5], 0 }
   0x3   :  { %18 = vsyncpa [#allocation5 + $0x1], 0  ;;  %s2689_s27 = smov 0   ;;  %s2691_s28 = smov 0  }
   0x4   :  { %s2693_s29 = smov 0   ;;  %s2695_s30 = smov 0  }
   0x5 LB: > { %s2710_s9 = sadd.s32 4294967295, %s2634_s30   ;;  %s2128_s10 = sadd.s32 4294967294, %s2634_s30   ;;  %s2634_s30 = sphi %s2695_s30, %s3433_s30   ;;  %s2630_s29 = sphi %s2693_s29, %s3432_s29   ;;  %s2626_s28 = sphi %s2691_s28, %s3431_s28   ;;  %s2622_s27 = sphi %s2689_s27, %s3430_s27  }
   0x6   : > { %s2714_s11 = sadd.s32 1, %s2634_s30   ;;  %s31_s12 = sadd.s32 1, %s2630_s29 }
   0x7   : > { %s28_s13 = ssub.s32 %s2634_s30, %s2714_s11  ;;  %p38_p0 = scmp.ne.s32.totalorder %s2630_s29, %s2626_s28 }
   0x8   : > { %p29_p1 = scmp.eq.s32.totalorder %s28_s13, 0  ;;  %p39_p2 = scmp.eq.s32.totalorder %s2634_s30, 0 }
   0x9   : > { %p44_p3 = scmp.ne.s32.totalorder %s2626_s28, %s2622_s27  ;;  %p45_p4 = scmp.eq.s32.totalorder %s2710_s9, 0 }
   0xa   : > { %s2726_s14 = scalar_select %p29_p1, %s2630_s29, %s31_s12  }
   0xb   : > { %p2728_p5 = por %p39_p2, %p38_p0  ;;  %p2732_p6 = por %p45_p4, %p44_p3 }
   0xc   : > { %p215_p7 = scmp.eq.s32.totalorder %s2710_s9, 1  ;;  %p221_p8 = scmp.eq.s32.totalorder %s2128_s10, 1 }
   0xd   : > { %p2430_p10 = scmp.lt.s32.totalorder %s2634_s30, 2  ;;  %s262_s19 = sand.u32 1, %s2630_s29  }
   0xe   : > { %p2739_p11 = por %p215_p7, %p38_p0  ;;  %p2743_p12 = por %p221_p8, %p44_p3 }
   0xf   : > { %s2215_s20 = sshll.u32 %s2634_s30, 11  ;;  %s2131_s21 = sshll.u32 %s262_s19, 7 }
  0x10   : > { %s3424_s17 = scalar_select %p2739_p11, 1, 0 }
  0x11   : > { %s3425_s18 = scalar_select %p2743_p12, 1, 0 }
  0x12   : > { %s2752_s24 = scalar_lea.hbm %s3412_s0, %s2215_s20  ;;  %s266_s25 = scalar_lea.vmem [#allocation3], %s2131_s21 }
  0x13   : > { %s274_s26 = sshll.u32 %s266_s25, 4  ;;  %p2756_p13 = pnand %p2430_p10, %p2728_p5  ;;  %s2760_s26 = int_to_ptr.vmem [resolvable:$true] %s274_s26 }
  0x14   : > { %s2762_s12 = scalar_lea.sflag [#allocation4], %s262_s19  ;;  %s2538_s13 = scalar_lea.hbm %s2752_s24, 2048 }
  0x15   : > { %p2539_p0 = scmp.ne.s32.totalorder %s2752_s24, %s2538_s13  ;;  %p2540_p1 = pneg %p2756_p13 }
  0x16   : > { %s2543_s21 = scalar_lea.hbm %s3412_s0, 4096  ;;  %p2544_p4 = scmp.lt.u32.totalorder %s2752_s24, %s3412_s0 }
  0x17   : > { %p2541_p2 = pnand %p2540_p1, %p2539_p0  ;;  %p2545_p5 = scmp.lt.u32.totalorder %s2543_s21, %s2538_s13 }
  0x18   : > { %p2547_p8 = scmp.lt.u32.totalorder %s2538_s13, %s2752_s24 }
  0x19   : > { %p2542_p3 = pneg %p2541_p2  ;;  %p2546_p7 = por %p2545_p5, %p2544_p4 }
  0x1b   : > { %p2548_p10 = por %p2547_p8, %p2546_p7 }
  0x1d   : > { %p2549_p9 = pnand %p2548_p10, %p2542_p3 }
  0x1f   : > { %2552 = shalt.err (!%p2549_p9)
}
  0x20   : > { %s2553_s19 = scalar_lea.vmem %s2760_s26, 2048  ;;  %s2636_s25 = smov [#allocation3]  }
  0x21   : > { %p2554_p0 = scmp.ne.s32.totalorder %s2760_s26, %s2553_s19  ;;  %s2558_s20 = sshll.u32 %s2636_s25, 4  ;;  %s2559_s20 = int_to_ptr.vmem [resolvable:$false] %s2558_s20 }
  0x22   : > { %s2560_s15 = scalar_lea.vmem %s2559_s20, 4096  ;;  %p2561_p11 = scmp.lt.s32.totalorder %s2760_s26, %s2559_s20 }
  0x23   : > { %p2556_p2 = pnand %p2554_p0, %p2540_p1  ;;  %p2562_p4 = scmp.lt.s32.totalorder %s2560_s15, %s2553_s19 }
  0x25   : > { %p2557_p12 = pneg %p2556_p2  ;;  %p2563_p5 = por %p2562_p4, %p2561_p11 }
  0x27   : > { %p2564_p7 = pnand %p2563_p5, %p2557_p12 }
  0x29   : > { %2567 = shalt.err (!%p2564_p7)
}
  0x2a   : > { %s2637_s13 = smov 128   ;;  %s2638_s21 = smov 8  }
  0x2b   : > { %2425 = dma.hbm_to_vmem [thread:$0]  (!%p2756_p13), %s2752_s24, 2048, %s2760_s26, %s2762_s12, %s2637_s13, %s2637_s13, %s2638_s21  }
  0x2c   : > { %p2135_p9 = scmp.ge.s32.totalorder %s2634_s30, 1  ;;  %p282_p1 = scmp.lt.s32.totalorder %s2634_s30, 3 }
  0x2e   : > { %p283_p3 = pnand %p2135_p9, %p282_p1 }
  0x2f   : > { %s2793_s22 = sand.u32 (!%p283_p3), 1, %s2626_s28  }
  0x30   : > { %286 = sbr.rel (%p283_p3) target bundleno = 1228 (0x4cc), region = 52  ;;  %s2136_s23 = sshll.u32 (!%p283_p3), %s2793_s22, 7 }
  0x31   : > { %s289_s19 = scalar_lea.sflag (!%p283_p3), [#allocation4], %s2793_s22  ;;  %s2797_s25 = scalar_lea.vmem (!%p283_p3), [#allocation3], %s2136_s23 }
  0x37   : > { %2613 = dma.done.wait (%p2732_p6), %s289_s19, 2048  }
  0x38   : > { %2615 = vsyncadd (%p2732_p6), %s289_s19, 4294965248  ;;  %vm477_vm0 = vcmask 260096   ;;  %v2639_v0 = vmov 0.0   ;;  %v2470_v1 = vld [vmem:[%s3414_s2] sm:$0xff]   ;;  %vm343_vm1 = vcmask 261120   ;;  %v2471_v2 = vld [vmem:[%s3414_s2 + $0x8] sm:$0xff]  }
  0x39   : > { %478 = vst.msk [vmem:[#allocation2 + $0x11] sm:$0x7f] %vm477_vm0, %v2639_v0  ;;  %479 = vst.msk [vmem:[#allocation2 + $0x29] sm:$0x7f] %vm477_vm0, %v2639_v0  ;;  %2290 = vmatprep.subr.bf16.mxu0 %v2470_v1  ;;  %v327_v3 = vld [vmem:[%s2797_s25] sm:$0xff]  ;;  %v328_v4 = vld [vmem:[%s2797_s25 + $0x8] sm:$0xff] }
  0x3a   : > { %480 = vst.msk [vmem:[#allocation2 + $0x41] sm:$0x7f] %vm477_vm0, %v2639_v0  ;;  %481 = vst.msk [vmem:[#allocation2 + $0x59] sm:$0x7f] %vm477_vm0, %v2639_v0  ;;  %2291 = vmatpush3.bf16.msra.mxu0 %v2470_v1  ;;  %v344_v5 = vsel %vm343_vm1, %v327_v3, 0.0  ;;  %v345_v6 = vsel %vm343_vm1, %v328_v4, 0.0 }
  0x3b   : > { %482 = vst.msk [vmem:[#allocation2 + $0x71] sm:$0x7f] %vm477_vm0, %v2639_v0  ;;  %483 = vst.msk [vmem:[#allocation2 + $0x89] sm:$0x7f] %vm477_vm0, %v2639_v0  ;;  %v2824_v7 = vld [vmem:[%s3413_s1 + $0x1] sm:$0xff]  ;;  %v2829_v8 = vld [vmem:[%s3413_s1 + $0x9] sm:$0xff]  ;;  %2292 = vmatprep.subr.bf16.mxu0 %v2471_v2  ;;  %v346_v10 = vadd.f32 %v345_v6, %v344_v5 }
  0x3c   : > { %484 = vst.msk [vmem:[#allocation2 + $0xa1] sm:$0x7f] %vm477_vm0, %v2639_v0  ;;  %485 = vst.msk [vmem:[#allocation2 + $0xb9] sm:$0x7f] %vm477_vm0, %v2639_v0  ;;  %v329_v9 = vld [vmem:[%s2797_s25 + $0x10] sm:$0xff]  ;;  %v445_v11 = vadd.f32 %v2824_v7, %v327_v3  ;;  %v446_v12 = vadd.f32 %v2829_v8, %v328_v4  ;;  %v330_v13 = vld [vmem:[%s2797_s25 + $0x18] sm:$0xff] }
  0x3d   : > { %v353_v14 = vsel %vm343_vm1, %v329_v9, 0.0  ;;  %v331_v15 = vld [vmem:[%s2797_s25 + $0x20] sm:$0xff]  ;;  %v332_v16 = vld [vmem:[%s2797_s25 + $0x28] sm:$0xff]  ;;  %v354_v17 = vsel %vm343_vm1, %v330_v13, 0.0  ;;  %v447_v18 = vadd.f32 %v2824_v7, %v329_v9  ;;  %v448_v19 = vadd.f32 %v2829_v8, %v330_v13  ;;  %v333_v21 = vld [vmem:[%s2797_s25 + $0x30] sm:$0xff]  ;;  %s2640_s21 = smov 96  }
  0x3e   : > { %v362_v20 = vsel %vm343_vm1, %v331_v15, 0.0  ;;  %v334_v22 = vld [vmem:[%s2797_s25 + $0x38] sm:$0xff]  ;;  %v347_v23 = vrot.slane %v346_v10, 4  ;;  %461 = vst.msk [vmem:[#allocation2 + $0x1] sm:$0xff] %vm343_vm1, %v445_v11  ;;  %462 = vst.msk [vmem:[#allocation2 + $0x9] sm:$0xff] %vm343_vm1, %v446_v12  ;;  %v355_v24 = vadd.f32 %v354_v17, %v353_v14  ;;  %v363_v25 = vsel %vm343_vm1, %v332_v16, 0.0  ;;  %2293 = vmatpush3.bf16.msra.mxu0 %v2471_v2 }
  0x3f   : > { %v449_v26 = vadd.f32 %v2824_v7, %v331_v15  ;;  %v335_v27 = vld [vmem:[%s2797_s25 + $0x40] sm:$0xff]  ;;  %v336_v28 = vld [vmem:[%s2797_s25 + $0x48] sm:$0xff]  ;;  %463 = vst.msk [vmem:[#allocation2 + $0x19] sm:$0xff] %vm343_vm1, %v447_v18  ;;  %464 = vst.msk [vmem:[#allocation2 + $0x21] sm:$0xff] %vm343_vm1, %v448_v19  ;;  %v364_v29 = vadd.f32 %v363_v25, %v362_v20  ;;  %v450_v30 = vadd.f32 %v2829_v8, %v332_v16  ;;  %v371_v31 = vsel %vm343_vm1, %v333_v21, 0.0  ;;  %s2641_s23 = smov 64  }
  0x40   : > { %v372_v32 = vsel %vm343_vm1, %v334_v22, 0.0  ;;  %v348_v33 = vadd.f32 %v347_v23, %v346_v10  ;;  %v356_v34 = vrot.slane %v355_v24, 4  ;;  %v451_v36 = vadd.f32 %v2824_v7, %v333_v21  ;;  %v337_v37 = vld [vmem:[%s2797_s25 + $0x50] sm:$0xff]  ;;  %v338_v46 = vld [vmem:[%s2797_s25 + $0x58] sm:$0xff]  ;;  %v339_v55 = vld [vmem:[%s2797_s25 + $0x60] sm:$0xff]  ;;  %s2137_s12 = sshll.u32 %s2793_s22, 3 }
  0x41   : > { %465 = vst.msk [vmem:[#allocation2 + $0x31] sm:$0xff] %vm343_vm1, %v449_v26  ;;  %v373_v35 = vadd.f32 %v372_v32, %v371_v31  ;;  %v365_v38 = vrot.slane %v364_v29, 4  ;;  %466 = vst.msk [vmem:[#allocation2 + $0x39] sm:$0xff] %vm343_vm1, %v450_v30  ;;  %v452_v39 = vadd.f32 %v2829_v8, %v334_v22  ;;  %v380_v40 = vsel %vm343_vm1, %v335_v27, 0.0  ;;  %v340_v1 = vld [vmem:[%s2797_s25 + $0x68] sm:$0xff]  ;;  %s2211_s13 = sshll.u32 %s2710_s9, 7 }
  0x42   : > { %v381_v41 = vsel %vm343_vm1, %v336_v28, 0.0  ;;  %v349_v42 = vrot.slane %v348_v33, 2  ;;  %v357_v43 = vadd.f32 %v356_v34, %v355_v24  ;;  %467 = vst.msk [vmem:[#allocation2 + $0x49] sm:$0xff] %vm343_vm1, %v451_v36  ;;  %v453_v48 = vadd.f32 %v2824_v7, %v335_v27  ;;  %v2881_v11 = vld [vmem:[%s3413_s1] sm:$0x1]  ;;  %v342_v34 = vld [vmem:[%s2797_s25 + $0x78] sm:$0xff]  ;;  %s3368_s16 = scalar_lea.hbm %s3420_s8, %s2211_s13 }
  0x43   : > { %v374_v44 = vrot.slane %v373_v35, 4  ;;  %v382_v45 = vadd.f32 %v381_v41, %v380_v40  ;;  %v366_v47 = vadd.f32 %v365_v38, %v364_v29  ;;  %468 = vst.msk [vmem:[#allocation2 + $0x51] sm:$0xff] %vm343_vm1, %v452_v39  ;;  %v454_v49 = vadd.f32 %v2829_v8, %v336_v28  ;;  %v341_v29 = vld [vmem:[%s2797_s25 + $0x70] sm:$0xff]  ;;  %s2045_s9 = scalar_lea.sflag [#allocation5], %s2793_s22  ;;  %p3427_p11 = scmp.ne.s32.totalorder %s3424_s17, 0 }
  0x44   : > { %v389_v50 = vsel %vm343_vm1, %v337_v37, 0.0  ;;  %v350_v51 = vadd.f32 %v349_v42, %v348_v33  ;;  %v358_v52 = vrot.slane %v357_v43, 2  ;;  %469 = vst.msk [vmem:[#allocation2 + $0x61] sm:$0xff] %vm343_vm1, %v453_v48  ;;  %v390_v57 = vsel %vm343_vm1, %v338_v46, 0.0  ;;  %s2643_s26 = smov [#allocation6]  }
  0x45   : > { %v375_v53 = vadd.f32 %v374_v44, %v373_v35  ;;  %v383_v54 = vrot.slane %v382_v45, 4  ;;  %v367_v56 = vrot.slane %v366_v47, 2  ;;  %470 = vst.msk [vmem:[#allocation2 + $0x69] sm:$0xff] %vm343_vm1, %v454_v49  ;;  %v455_v58 = vadd.f32 %v2824_v7, %v337_v37  ;;  %s2572_s10 = sshll.u32 %s2643_s26, 4  ;;  %s2573_s10 = int_to_ptr.vmem [resolvable:$false] %s2572_s10 }
  0x46   : > { %v456_v59 = vadd.f32 %v2829_v8, %v338_v46  ;;  %v351_v60 = vrot.slane %v350_v51, 1  ;;  %v359_v61 = vadd.f32 %v358_v52, %v357_v43  ;;  %v391_v3 = vadd.f32 %v390_v57, %v389_v50  ;;  %v491_v42 = vld [vmem:[#allocation2 + $0x28] sm:$0xff]  ;;  %v490_v57 = vld [vmem:[#allocation2 + $0x20] sm:$0xff] }
  0x47   : > { %v376_v62 = vrot.slane %v375_v53, 2  ;;  %v384_v63 = vadd.f32 %v383_v54, %v382_v45  ;;  %v368_v2 = vadd.f32 %v367_v56, %v366_v47  ;;  %471 = vst.msk [vmem:[#allocation2 + $0x79] sm:$0xff] %vm343_vm1, %v455_v58  ;;  %v398_v4 = vsel %vm343_vm1, %v339_v55, 0.0  ;;  %v487_v50 = vld [vmem:[#allocation2 + $0x8] sm:$0xff]  ;;  %v488_v56 = vld [vmem:[#allocation2 + $0x10] sm:$0xff] }
  0x48   : > { %472 = vst.msk [vmem:[#allocation2 + $0x81] sm:$0xff] %vm343_vm1, %v456_v59  ;;  %v352_v5 = vadd.f32 %v351_v60, %v350_v51  ;;  %v360_v6 = vrot.slane %v359_v61, 1  ;;  %v392_v13 = vrot.slane %v391_v3, 4  ;;  %v399_v14 = vsel %vm343_vm1, %v340_v1, 0.0 }
  0x49   : > { %v377_v9 = vadd.f32 %v376_v62, %v375_v53  ;;  %v385_v10 = vrot.slane %v384_v63, 2  ;;  %v369_v12 = vrot.slane %v368_v2, 1  ;;  %vm434_vm2 = vcmask 253952  }
  0x4a   : > { %v417_v15 = vmul.f32 0.0625, %v352_v5  ;;  %v361_v16 = vadd.f32 %v360_v6, %v359_v61  ;;  %v393_v20 = vadd.f32 %v392_v13, %v391_v3  ;;  %v400_v21 = vadd.f32 %v399_v14, %v398_v4  ;;  %v493_v6 = vld [vmem:[#allocation2 + $0x38] sm:$0xff] }
  0x4b   : > { %v378_v17 = vrot.slane %v377_v9, 1  ;;  %v386_v18 = vadd.f32 %v385_v10, %v384_v63  ;;  %v370_v19 = vadd.f32 %v369_v12, %v368_v2  ;;  %v457_v33 = vadd.f32 %v2824_v7, %v339_v55  ;;  %v497_v14 = vld [vmem:[#allocation2 + $0x58] sm:$0xff] }
  0x4c   : > { %v426_v22 = vadd.f32 %v2881_v11, %v417_v15  ;;  %v418_v23 = vmul.f32 0.0625, %v361_v16  ;;  %v394_v27 = vrot.slane %v393_v20, 2  ;;  %v401_v28 = vrot.slane %v400_v21, 4 }
  0x4d   : > { %v379_v24 = vadd.f32 %v378_v17, %v377_v9  ;;  %v387_v25 = vrot.slane %v386_v18, 1  ;;  %v419_v26 = vmul.f32 0.0625, %v370_v19  ;;  %v458_v40 = vadd.f32 %v2829_v8, %v340_v1  ;;  %473 = vst.msk [vmem:[#allocation2 + $0x91] sm:$0xff] %vm343_vm1, %v457_v33  ;;  %v496_v9 = vld [vmem:[#allocation2 + $0x50] sm:$0xff]  ;;  %v494_v17 = vld [vmem:[#allocation2 + $0x40] sm:$0xff] }
  0x4e   : > { %435 = vst.msk [vmem:[#allocation2] sm:$0x1] %vm434_vm2, %v426_v22  ;;  %v427_v30 = vadd.f32 %v2881_v11, %v418_v23  ;;  %v395_v36 = vadd.f32 %v394_v27, %v393_v20  ;;  %v402_v37 = vadd.f32 %v401_v28, %v400_v21  ;;  %v407_v41 = vsel %vm343_vm1, %v341_v29, 0.0  ;;  %v499_v28 = vld [vmem:[#allocation2 + $0x68] sm:$0xff] }
  0x4f   : > { %v420_v31 = vmul.f32 0.0625, %v379_v24  ;;  %v388_v32 = vadd.f32 %v387_v25, %v386_v18  ;;  %v428_v35 = vadd.f32 %v2881_v11, %v419_v26  ;;  %v408_v45 = vsel %vm343_vm1, %v342_v34, 0.0  ;;  %474 = vst.msk [vmem:[#allocation2 + $0x99] sm:$0xff] %vm343_vm1, %v458_v40 }
  0x50   : > { %436 = vst.msk [vmem:[#allocation2 + $0x18] sm:$0x1] %vm434_vm2, %v427_v30  ;;  %v396_v43 = vrot.slane %v395_v36, 1  ;;  %v403_v44 = vrot.slane %v402_v37, 2  ;;  %v409_v47 = vadd.f32 %v408_v45, %v407_v41  ;;  %v459_v48 = vadd.f32 %v2824_v7, %v341_v29  ;;  %v502_v30 = vld [vmem:[#allocation2 + $0x80] sm:$0xff] }
  0x51   : > { %v429_v38 = vadd.f32 %v2881_v11, %v420_v31  ;;  %v421_v39 = vmul.f32 0.0625, %v388_v32  ;;  %437 = vst.msk [vmem:[#allocation2 + $0x30] sm:$0x1] %vm434_vm2, %v428_v35  ;;  %v460_v49 = vadd.f32 %v2829_v8, %v342_v34  ;;  %v513_v53 = vpack.c.bf16 %v491_v42, %v491_v42  ;;  %v503_v31 = vld [vmem:[#allocation2 + $0x88] sm:$0xff] }
  0x52   : > { %v397_v51 = vadd.f32 %v396_v43, %v395_v36  ;;  %v404_v52 = vadd.f32 %v403_v44, %v402_v37  ;;  %v410_v54 = vrot.slane %v409_v47, 4  ;;  %475 = vst.msk [vmem:[#allocation2 + $0xa9] sm:$0xff] %vm343_vm1, %v459_v48  ;;  %v517_v21 = vpack.c.bf16 %v497_v14, %v497_v14  ;;  %v500_v37 = vld [vmem:[#allocation2 + $0x70] sm:$0xff] }
  0x53   : > { %438 = vst.msk [vmem:[#allocation2 + $0x48] sm:$0x1] %vm434_vm2, %v429_v38  ;;  %v430_v46 = vadd.f32 %v2881_v11, %v421_v39  ;;  %v547_v2 = vunpack.c.l.b16 %v513_v53  ;;  %v521_v36 = vpack.c.bf16 %v503_v31, %v503_v31  ;;  %vm1564_vm3 = vcmask 1043456  }
  0x54   : > { %476 = vst.msk [vmem:[#allocation2 + $0xb1] sm:$0xff] %vm343_vm1, %v460_v49  ;;  %v422_v58 = vmul.f32 0.0625, %v397_v51  ;;  %v405_v59 = vrot.slane %v404_v52, 1  ;;  %v411_v7 = vadd.f32 %v410_v54, %v409_v47  ;;  %v553_v26 = vunpack.c.l.b16 %v517_v21  ;;  %v918_v54 = vld [vmem:[%s3416_s4] sm:$0xff] }
  0x55   : > { %439 = vst.msk [vmem:[#allocation2 + $0x60] sm:$0x1] %vm434_vm2, %v430_v46  ;;  %v486_v55 = vld [vmem:[#allocation2] sm:$0xff]  ;;  %vm1210_vm4 = vcmask 31744   ;;  %vm2642_vm6 = vmmov 0   ;;  %vm1972_vm7 = vcmask 1041409  }
  0x56   : > { %v510_v60 = vpack.c.bf16 %v487_v50, %v486_v55  ;;  %v431_v8 = vadd.f32 %v2881_v11, %v422_v58  ;;  %v406_v62 = vadd.f32 %v405_v59, %v404_v52  ;;  %v412_v3 = vrot.slane %v411_v7, 2  ;;  %v505_v41 = vld [vmem:[#allocation2 + $0x98] sm:$0xff]  ;;  %v506_v46 = vld [vmem:[#allocation2 + $0xa0] sm:$0xff]  ;;  %v919_v55 = vld [vmem:[%s3416_s4 + $0x8] sm:$0xff] }
  0x57   : > { %v489_v61 = vld [vmem:[#allocation2 + $0x18] sm:$0xff]  ;;  %vm1974_vm8 = vcmask 1042434   ;;  %vm1976_vm9 = vcmask 1043459   ;;  %vm1978_vm10 = vcmask 1044484   ;;  %vm1980_vm11 = vcmask 1045509  }
  0x58   : > { %2294 = vmatprep.mubr.msk.bf16.mxu0 %vm343_vm1, %v510_v60  ;;  %v512_v63 = vpack.c.bf16 %v490_v57, %v489_v61  ;;  %v2216_v1 = vpack.c.bf16 %v489_v61, %v488_v56  ;;  %440 = vst.msk [vmem:[#allocation2 + $0x78] sm:$0x1] %vm434_vm2, %v431_v8  ;;  %v423_v4 = vmul.f32 0.0625, %v406_v62  ;;  %v413_v10 = vadd.f32 %v412_v3, %v411_v7  ;;  %v492_v12 = vld [vmem:[#allocation2 + $0x30] sm:$0xff]  ;;  %v921_v58 = vld [vmem:[%s3416_s4 + $0x18] sm:$0xff] }
  0x59   : > { %v514_v19 = vpack.c.bf16 %v493_v6, %v492_v12  ;;  %v2408_v56 = vpack.c.bf16 %v919_v55, %v918_v54  ;;  %v920_v57 = vld [vmem:[%s3416_s4 + $0x10] sm:$0xff]  ;;  %v2939_v60 = vld [vmem:[%s3415_s3] ss:$0 sm:$0xff]  ;;  %vm1982_vm12 = vcmask 1046534   ;;  %vm1984_vm13 = vcmask 1047559  }
  0x5a   : > { %2295 = vmatmul.mubr.msk.bf16.vlgmr.msra.gmra.mrb[0].mxu0 %vm343_vm1, %v2216_v1  ;;  %v546_v5 = vunpack.c.h.b16 %v512_v63  ;;  %v495_v13 = vld [vmem:[#allocation2 + $0x48] sm:$0xff]  ;;  %v432_v15 = vadd.f32 %v2881_v11, %v423_v4  ;;  %v414_v18 = vrot.slane %v413_v10, 1  ;;  %v2412_v59 = vpack.c.bf16 %v921_v58, %v920_v57 }
  0x5b   : > { %v516_v20 = vpack.c.bf16 %v496_v9, %v495_v13  ;;  %v2217_v23 = vpack.c.bf16 %v495_v13, %v494_v17  ;;  %v508_v42 = vld [vmem:[#allocation2 + $0xb0] sm:$0xff]  ;;  %v509_v45 = vld [vmem:[#allocation2 + $0xb8] sm:$0xff]  ;;  %2409 = vmatprep.subr.bf16.mxu1 %v2408_v56  ;;  %vm2042_vm14 = vcmask 130048  }
  0x5c   : > { %v579_v16 = vpack.c.b16 %v547_v2, %v546_v5  ;;  %441 = vst.msk [vmem:[#allocation2 + $0x90] sm:$0x1] %vm434_vm2, %v432_v15  ;;  %v415_v22 = vadd.f32 %v414_v18, %v413_v10  ;;  %v498_v29 = vld [vmem:[#allocation2 + $0x60] sm:$0xff]  ;;  %v525_v49 = vpack.c.bf16 %v509_v45, %v509_v45  ;;  %2411 = vmatpush3.bf16.msra.mxu1 %v2408_v56 }
  0x5d   : > { %v552_v25 = vunpack.c.h.b16 %v516_v20  ;;  %v518_v34 = vpack.c.bf16 %v499_v28, %v498_v29  ;;  %2413 = vmatprep.subr.bf16.mxu1 %v2412_v59 }
  0x5e   : > { %2298 = vmatprep.mubr.msk.bf16.mxu0 %vm343_vm1, %v579_v16  ;;  %v424_v24 = vmul.f32 0.0625, %v415_v22  ;;  %v565_v52 = vunpack.c.l.b16 %v525_v49 }
  0x5f   : > { %v582_v32 = vpack.c.b16 %v553_v26, %v552_v25  ;;  %v501_v33 = vld [vmem:[#allocation2 + $0x78] sm:$0xff] }
  0x60   : > { %v433_v27 = vadd.f32 %v2881_v11, %v424_v24  ;;  %v520_v35 = vpack.c.bf16 %v502_v30, %v501_v33  ;;  %v559_v11 = vunpack.c.l.b16 %v521_v36  ;;  %v2218_v39 = vpack.c.bf16 %v501_v33, %v500_v37  ;;  %2415 = vmatpush3.bf16.msra.mxu1 %v2412_v59 }
  0x62   : > { %2299 = vmatmul.mubr.msk.bf16.gmra.mrb[4].mxu0 %vm343_vm1, %v514_v19  ;;  %442 = vst.msk [vmem:[#allocation2 + $0xa8] sm:$0x1] %vm434_vm2, %v433_v27  ;;  %v558_v38 = vunpack.c.h.b16 %v520_v35 }
  0x63   : > { %2302 = vmatprep.mubr.msk.bf16.mxu0 %vm343_vm1, %v2217_v23  ;;  %v504_v43 = vld [vmem:[#allocation2 + $0x90] sm:$0xff] }
  0x64   : > { %v585_v40 = vpack.c.b16 %v559_v11, %v558_v38  ;;  %v522_v47 = vpack.c.bf16 %v505_v41, %v504_v43 }
  0x69   : > { %v507_v44 = vld [vmem:[#allocation2 + $0xa8] sm:$0xff] }
  0x6a   : > { %2303 = vmatmul.mubr.msk.bf16.gmra.mrb[8].mxu0 %vm343_vm1, %v582_v32  ;;  %v524_v48 = vpack.c.bf16 %v508_v42, %v507_v44  ;;  %v2219_v50 = vpack.c.bf16 %v507_v44, %v506_v46  ;;  %v766_v46 = vlaneseq }
  0x6b   : > { %2306 = vmatprep.mubr.msk.bf16.mxu0 %vm343_vm1, %v518_v34 }
  0x6c   : > { %v564_v51 = vunpack.c.h.b16 %v524_v48 }
  0x6e   : > { %v588_v53 = vpack.c.b16 %v565_v52, %v564_v51 }
  0x72   : > { %2307 = vmatmul.mubr.msk.bf16.gmra.mrb[12].mxu0 %vm343_vm1, %v2218_v39 }
  0x73   : > { %2310 = vmatprep.mubr.msk.bf16.mxu0 %vm343_vm1, %v585_v40 }
  0x7a   : > { %2311 = vmatmul.mubr.msk.bf16.gmra.mrb[16].mxu0 %vm343_vm1, %v522_v47  ;;  %v3029_v47 = vshrl.u32 %v766_v46, 7 }
  0x7b   : > { %2314 = vmatprep.mubr.msk.bf16.mxu0 %vm343_vm1, %v2219_v50 }
  0x7c   : > { %v3032_v48 = vsub.s32 0, %v3029_v47 }
  0x82   : > { %2315 = vmatmul.mubr.msk.bf16.gmra.mrb[20].mxu0 %vm343_vm1, %v588_v53 }
 0x12d   : > { %v2296_v7 = vpop.f32.mrb[0].mxu0 }
 0x12e   : > { %v2942_v61 = vadd.f32 %v2296_v7, %v2939_v60  ;;  %v671_v8 = vpop.f32.mrb[1].mxu0 }
 0x12f   : > { %v2945_v62 = vadd.f32 %v2939_v60, %v671_v8  ;;  %v2297_v63 = vpop.f32.mrb[2].mxu0 }
 0x130   : > { %826 = vrot.lane.b32.xlu1 %v2942_v61, %s2640_s21  ;;  %v674_v1 = vpop.f32.mrb[3].mxu0  ;;  %v2952_v2 = vadd.f32 %v2297_v63, %v2939_v60 }
 0x131   : > { %822 = vrot.lane.b32.xlu0 %v2945_v62, %s2640_s21  ;;  %v2955_v3 = vadd.f32 %v2939_v60, %v674_v1  ;;  %v769_v49 = vrot.slane %v2945_v62, %v3032_v48 }
 0x132   : > { %v773_v57 = vrot.slane %v2952_v2, %v3032_v48 }
 0x134   : > { %828 = vrot.lane.b32.xlu1 %v2952_v2, %s2640_s21 }
 0x135   : > { %v2300_v4 = vpop.f32.mrb[4].mxu0  ;;  %824 = vrot.lane.b32.xlu0 %v2955_v3, %s2640_s21 }
 0x136   : > { %v687_v5 = vpop.f32.mrb[5].mxu0  ;;  %v2965_v13 = vadd.f32 %v2300_v4, %v2939_v60 }
 0x137   : > { %v688_v6 = vadd.f32 %v2939_v60, %v687_v5  ;;  %v2301_v9 = vpop.f32.mrb[6].mxu0 }
 0x138   : > { %v690_v10 = vpop.f32.mrb[7].mxu0  ;;  %v699_v14 = vadd.f32 %v2301_v9, %v2939_v60 }
 0x139   : > { %v691_v12 = vadd.f32 %v2939_v60, %v690_v10  ;;  %830 = vrot.lane.b32.xlu0 %v688_v6, %s2640_s21 }
 0x13b   : > { %832 = vrot.lane.b32.xlu1 %v691_v12, %s2640_s21 }
 0x13d   : > { %v2304_v15 = vpop.f32.mrb[8].mxu0  ;;  %834 = vrot.lane.b32.xlu0 %v2965_v13, %s2640_s21 }
 0x13e   : > { %v703_v16 = vpop.f32.mrb[9].mxu0  ;;  %v712_v21 = vadd.f32 %v2304_v15, %v2939_v60 }
 0x13f   : > { %v704_v17 = vadd.f32 %v2939_v60, %v703_v16  ;;  %v2305_v18 = vpop.f32.mrb[10].mxu0  ;;  %836 = vrot.lane.b32.xlu1 %v699_v14, %s2640_s21 }
 0x140   : > { %v706_v19 = vpop.f32.mrb[11].mxu0  ;;  %v715_v22 = vadd.f32 %v2305_v18, %v2939_v60 }
 0x141   : > { %v2974_v20 = vadd.f32 %v2939_v60, %v706_v19  ;;  %838 = vrot.lane.b32.xlu0 %v704_v17, %s2640_s21 }
 0x143   : > { %840 = vrot.lane.b32.xlu1 %v2974_v20, %s2640_s21 }
 0x145   : > { %v2308_v23 = vpop.f32.mrb[12].mxu0  ;;  %842 = vrot.lane.b32.xlu0 %v712_v21, %s2640_s21 }
 0x146   : > { %v719_v24 = vpop.f32.mrb[13].mxu0  ;;  %v728_v29 = vadd.f32 %v2308_v23, %v2939_v60 }
 0x147   : > { %v2983_v25 = vadd.f32 %v2939_v60, %v719_v24  ;;  %v2309_v26 = vpop.f32.mrb[14].mxu0  ;;  %844 = vrot.lane.b32.xlu1 %v715_v22, %s2640_s21 }
 0x148   : > { %v722_v27 = vpop.f32.mrb[15].mxu0  ;;  %v2992_v30 = vadd.f32 %v2309_v26, %v2939_v60 }
 0x149   : > { %v723_v28 = vadd.f32 %v2939_v60, %v722_v27  ;;  %846 = vrot.lane.b32.xlu0 %v2983_v25, %s2640_s21 }
 0x14a   : > { %v789_v23 = vrot.slane %v2992_v30, %v3032_v48 }
 0x14b   : > { %848 = vrot.lane.b32.xlu1 %v723_v28, %s2640_s21 }
 0x14d   : > { %v2312_v31 = vpop.f32.mrb[16].mxu0  ;;  %850 = vrot.lane.b32.xlu0 %v728_v29, %s2640_s21 }
 0x14e   : > { %v735_v32 = vpop.f32.mrb[17].mxu0  ;;  %v3001_v37 = vadd.f32 %v2312_v31, %v2939_v60 }
 0x14f   : > { %v736_v33 = vadd.f32 %v2939_v60, %v735_v32  ;;  %v2313_v34 = vpop.f32.mrb[18].mxu0  ;;  %852 = vrot.lane.b32.xlu1 %v2992_v30, %s2640_s21 }
 0x150   : > { %v738_v35 = vpop.f32.mrb[19].mxu0  ;;  %v747_v38 = vadd.f32 %v2313_v34, %v2939_v60 }
 0x151   : > { %v739_v36 = vadd.f32 %v2939_v60, %v738_v35  ;;  %854 = vrot.lane.b32.xlu0 %v736_v33, %s2640_s21 }
 0x153   : > { %856 = vrot.lane.b32.xlu1 %v739_v36, %s2640_s21 }
 0x155   : > { %v2316_v11 = vpop.f32.mrb[20].mxu0  ;;  %858 = vrot.lane.b32.xlu0 %v3001_v37, %s2640_s21 }
 0x156   : > { %v751_v39 = vpop.f32.mrb[21].mxu0  ;;  %v760_v44 = vadd.f32 %v2316_v11, %v2939_v60 }
 0x157   : > { %v752_v40 = vadd.f32 %v2939_v60, %v751_v39  ;;  %v2317_v41 = vpop.f32.mrb[22].mxu0  ;;  %860 = vrot.lane.b32.xlu1 %v747_v38, %s2640_s21 }
 0x158   : > { %v754_v42 = vpop.f32.mrb[23].mxu0  ;;  %v763_v45 = vadd.f32 %v2317_v41, %v2939_v60 }
 0x159   : > { %v3010_v43 = vadd.f32 %v2939_v60, %v754_v42  ;;  %862 = vrot.lane.b32.xlu0 %v752_v40, %s2640_s21  ;;  %v1491_v42 = vld [vmem:[%s3417_s5] sm:$0xf] }
 0x15a   : > { %2362 = vmatprep.subr.msk.mxu0 %vm1564_vm3, %v1491_v42  ;;  %2416 = vmatprep.subr.msk.mxu1 %vm1564_vm3, %v1491_v42 }
 0x15b   : > { %864 = vrot.lane.b32.xlu1 %v3010_v43, %s2640_s21  ;;  %2363 = vmatpush3.msk.msra.mxu0 %vm1564_vm3, %v1491_v42 }
 0x15d   : > { %866 = vrot.lane.b32.xlu0 %v760_v44, %s2640_s21 }
 0x15f   : > { %868 = vrot.lane.b32.xlu1 %v763_v45, %s2640_s21  ;;  %s324_s21 = scalar_lea.vmem [#allocation6], %s2137_s12  ;;  %s2574_s12 = scalar_lea.vmem %s2573_s10, 256 }
 0x161   : > { %1753 = vrot.lane.b32.xlu0 %v2945_v62, %s2641_s23 }
 0x163   : > { %1755 = vrot.lane.b32.xlu1 %v2955_v3, %s2641_s23 }
 0x165   : > { %1759 = vrot.lane.b32.xlu0 %v2952_v2, %s2641_s23 }
 0x167   : > { %1761 = vrot.lane.b32.xlu1 %v688_v6, %s2641_s23  ;;  %v781_v6 = vrot.slane %v2974_v20, %v3032_v48 }
 0x169   : > { %1765 = vrot.lane.b32.xlu0 %v2965_v13, %s2641_s23 }
 0x16b   : > { %1767 = vrot.lane.b32.xlu1 %v699_v14, %s2641_s23  ;;  %v785_v14 = vrot.slane %v2983_v25, %v3032_v48 }
 0x16d   : > { %1757 = vrot.lane.b32.xlu0 %v2942_v61, %s2641_s23  ;;  %v777_v61 = vrot.slane %v2965_v13, %v3032_v48 }
 0x16f   : > { %1763 = vrot.lane.b32.xlu1 %v691_v12, %s2641_s23 }
 0x171   : > { %1771 = vrot.lane.b32.xlu0 %v2974_v20, %s2641_s23 }
 0x173   : > { %1773 = vrot.lane.b32.xlu1 %v712_v21, %s2641_s23 }
 0x175   : > { %1769 = vrot.lane.b32.xlu0 %v704_v17, %s2641_s23 }
 0x177   : > { %1777 = vrot.lane.b32.xlu1 %v2983_v25, %s2641_s23 }
 0x179   : > { %1779 = vrot.lane.b32.xlu0 %v723_v28, %s2641_s23  ;;  %v793_v28 = vrot.slane %v3001_v37, %v3032_v48 }
 0x17b   : > { %1775 = vrot.lane.b32.xlu1 %v715_v22, %s2641_s23 }
 0x17d   : > { %1783 = vrot.lane.b32.xlu0 %v2992_v30, %s2641_s23 }
 0x17f   : > { %1785 = vrot.lane.b32.xlu1 %v736_v33, %s2641_s23 }
 0x181   : > { %1781 = vrot.lane.b32.xlu0 %v728_v29, %s2641_s23 }
 0x183   : > { %1789 = vrot.lane.b32.xlu1 %v3001_v37, %s2641_s23 }
 0x185   : > { %1791 = vrot.lane.b32.xlu0 %v747_v38, %s2641_s23  ;;  %v797_v38 = vrot.slane %v3010_v43, %v3032_v48 }
 0x187   : > { %1787 = vrot.lane.b32.xlu1 %v739_v36, %s2641_s23 }
 0x189   : > { %1795 = vrot.lane.b32.xlu0 %v3010_v43, %s2641_s23  ;;  %v3079_v43 = vadd.s32 16, %v3029_v47 }
 0x18b   : > { %1797 = vrot.lane.b32.xlu1 %v760_v44, %s2641_s23  ;;  %vm1185_vm5 = vcmp.lt.s32.totalorder %v3079_v43, 17 }
 0x18d   : > { %1793 = vrot.lane.b32.xlu0 %v752_v40, %s2641_s23 }
 0x18f   : > { %1799 = vrot.lane.b32.xlu1 %v763_v45, %s2641_s23  ;;  %s2058_s23 = sshll.u32 %s324_s21, 4  ;;  %s3370_s23 = int_to_ptr.vmem [resolvable:$true] %s2058_s23 }
 0x190   : > { %s2568_s24 = scalar_lea.vmem %s3370_s23, 128  ;;  %p2575_p8 = scmp.lt.s32.totalorder %s3370_s23, %s2573_s10 }
 0x191   : > { %p2569_p6 = scmp.ne.s32.totalorder %s3370_s23, %s2568_s24  ;;  %p2576_p10 = scmp.lt.s32.totalorder %s2574_s12, %s2568_s24 }
 0x193   : > { %p2570_p12 = pnand %p2569_p6, %p3427_p11  ;;  %p2577_p0 = por %p2576_p10, %p2575_p8 }
 0x195   : > { %p2571_p13 = pneg %p2570_p12 }
 0x197   : > { %p2578_p2 = pnand %p2577_p0, %p2571_p13 }
 0x1a2   : > { %v827_v50 = vpop.permute.xlu1 %826 }
 0x1a3   : > { %v823_v51 = vpop.permute.xlu0 %822  ;;  %v896_v55 = vmul.f32 %v827_v50, %v769_v49 }
 0x1a4   : > { %v894_v52 = vmul.f32 %v823_v51, %v769_v49 }
 0x1a6   : > { %2326 = vmatprep.mubr.msk.f32.mxu1 %vm343_vm1, %v894_v52  ;;  %v829_v56 = vpop.permute.xlu1 %828 }
 0x1a7   : > { %v825_v53 = vpop.permute.xlu0 %824  ;;  %v897_v59 = vmul.f32 %v829_v56, %v773_v57 }
 0x1a8   : > { %v895_v54 = vmul.f32 %v825_v53, %v769_v49 }
 0x1aa   : > { %2327 = vmatmul.mubr.msk.f32.vlgmr.msra.gmra.mrb[0].mxu1 %vm343_vm1, %v895_v54 }
 0x1ab   : > { %v831_v58 = vpop.permute.xlu0 %830  ;;  %2329 = vmatprep.mubr.msk.f32.mxu1 %vm343_vm1, %v896_v55  ;;  %2417 = vmatpush3.msk.msra.mxu1 %vm1564_vm3, %v1491_v42 }
 0x1ac   : > { %v898_v60 = vmul.f32 %v831_v58, %v773_v57  ;;  %2400 = vmatprep.subr.bf16.mxu1 %v2639_v0 }
 0x1ad   : > { %v833_v7 = vpop.permute.xlu1 %832 }
 0x1ae   : > { %2330 = vmatmul.mubr.msk.f32.gmra.mrb[2].mxu1 %vm343_vm1, %v897_v59  ;;  %v899_v62 = vmul.f32 %v833_v7, %v773_v57 }
 0x1af   : > { %v835_v8 = vpop.permute.xlu0 %834  ;;  %2332 = vmatprep.mubr.msk.f32.mxu1 %vm343_vm1, %v898_v60 }
 0x1b0   : > { %v900_v63 = vmul.f32 %v835_v8, %v777_v61 }
 0x1b1   : > { %v837_v1 = vpop.permute.xlu1 %836 }
 0x1b2   : > { %2333 = vmatmul.mubr.msk.f32.gmra.mrb[4].mxu1 %vm343_vm1, %v899_v62  ;;  %v901_v3 = vmul.f32 %v837_v1, %v777_v61 }
 0x1b3   : > { %v839_v2 = vpop.permute.xlu0 %838  ;;  %2335 = vmatprep.mubr.msk.f32.mxu1 %vm343_vm1, %v900_v63 }
 0x1b4   : > { %v902_v4 = vmul.f32 %v839_v2, %v777_v61 }
 0x1b5   : > { %v841_v5 = vpop.permute.xlu1 %840 }
 0x1b6   : > { %2336 = vmatmul.mubr.msk.f32.gmra.mrb[6].mxu1 %vm343_vm1, %v901_v3  ;;  %v903_v10 = vmul.f32 %v841_v5, %v781_v6 }
 0x1b7   : > { %v843_v9 = vpop.permute.xlu0 %842  ;;  %2338 = vmatprep.mubr.msk.f32.mxu1 %vm343_vm1, %v902_v4 }
 0x1b8   : > { %v904_v12 = vmul.f32 %v843_v9, %v781_v6 }
 0x1b9   : > { %v845_v13 = vpop.permute.xlu1 %844 }
 0x1ba   : > { %2339 = vmatmul.mubr.msk.f32.gmra.mrb[8].mxu1 %vm343_vm1, %v903_v10  ;;  %v905_v16 = vmul.f32 %v845_v13, %v781_v6 }
 0x1bb   : > { %v847_v15 = vpop.permute.xlu0 %846  ;;  %2341 = vmatprep.mubr.msk.f32.mxu1 %vm343_vm1, %v904_v12 }
 0x1bc   : > { %v906_v17 = vmul.f32 %v847_v15, %v785_v14 }
 0x1bd   : > { %v849_v18 = vpop.permute.xlu1 %848 }
 0x1be   : > { %2342 = vmatmul.mubr.msk.f32.gmra.mrb[10].mxu1 %vm343_vm1, %v905_v16  ;;  %v907_v20 = vmul.f32 %v849_v18, %v785_v14 }
 0x1bf   : > { %v851_v19 = vpop.permute.xlu0 %850  ;;  %2344 = vmatprep.mubr.msk.f32.mxu1 %vm343_vm1, %v906_v17 }
 0x1c0   : > { %v908_v21 = vmul.f32 %v851_v19, %v785_v14 }
 0x1c1   : > { %v853_v22 = vpop.permute.xlu1 %852 }
 0x1c2   : > { %2345 = vmatmul.mubr.msk.f32.gmra.mrb[12].mxu1 %vm343_vm1, %v907_v20  ;;  %v909_v25 = vmul.f32 %v853_v22, %v789_v23 }
 0x1c3   : > { %v855_v24 = vpop.permute.xlu0 %854  ;;  %2347 = vmatprep.mubr.msk.f32.mxu1 %vm343_vm1, %v908_v21 }
 0x1c4   : > { %v910_v26 = vmul.f32 %v855_v24, %v789_v23 }
 0x1c5   : > { %v857_v27 = vpop.permute.xlu1 %856 }
 0x1c6   : > { %2348 = vmatmul.mubr.msk.f32.gmra.mrb[14].mxu1 %vm343_vm1, %v909_v25  ;;  %v911_v31 = vmul.f32 %v857_v27, %v789_v23 }
 0x1c7   : > { %v859_v29 = vpop.permute.xlu0 %858  ;;  %2350 = vmatprep.mubr.msk.f32.mxu1 %vm343_vm1, %v910_v26 }
 0x1c8   : > { %v912_v32 = vmul.f32 %v859_v29, %v793_v28 }
 0x1c9   : > { %v861_v33 = vpop.permute.xlu1 %860 }
 0x1ca   : > { %2351 = vmatmul.mubr.msk.f32.gmra.mrb[16].mxu1 %vm343_vm1, %v911_v31  ;;  %v913_v34 = vmul.f32 %v861_v33, %v793_v28 }
 0x1cb   : > { %v863_v30 = vpop.permute.xlu0 %862  ;;  %2353 = vmatprep.mubr.msk.f32.mxu1 %vm343_vm1, %v912_v32 }
 0x1cc   : > { %v914_v35 = vmul.f32 %v863_v30, %v793_v28 }
 0x1cd   : > { %v865_v36 = vpop.permute.xlu1 %864 }
 0x1ce   : > { %2354 = vmatmul.mubr.msk.f32.gmra.mrb[18].mxu1 %vm343_vm1, %v913_v34  ;;  %v915_v11 = vmul.f32 %v865_v36, %v797_v38 }
 0x1cf   : > { %v867_v37 = vpop.permute.xlu0 %866  ;;  %2356 = vmatprep.mubr.msk.f32.mxu1 %vm343_vm1, %v914_v35 }
 0x1d0   : > { %v916_v39 = vmul.f32 %v867_v37, %v797_v38 }
 0x1d1   : > { %v869_v40 = vpop.permute.xlu1 %868 }
 0x1d2   : > { %2357 = vmatmul.mubr.msk.f32.gmra.mrb[20].mxu1 %vm343_vm1, %v915_v11  ;;  %v917_v41 = vmul.f32 %v869_v40, %v797_v38 }
 0x1d3   : > { %2359 = vmatprep.mubr.msk.f32.mxu1 %vm343_vm1, %v916_v39 }
 0x1d6   : > { %2360 = vmatmul.mubr.msk.f32.gmra.mrb[22].mxu1 %vm343_vm1, %v917_v41 }
 0x27d   : > { %v2328_v44 = vpop.f32.mrb[0].mxu1 }
 0x27e   : > { %v1212_v45 = vsel %vm1210_vm4, %v2328_v44, -inf  ;;  %v1060_v46 = vpop.f32.mrb[1].mxu1 }
 0x27f   : > { %v1211_v48 = vsel %vm1210_vm4, %v1060_v46, -inf }
 0x280   : > { %v1213_v49 = vmax.f32 %v1211_v48, %v1212_v45 }
 0x281   : > { %v3084_v50 = vpop.f32.mrb[2].mxu1 }
 0x282   : > { %v1070_v51 = vpop.f32.mrb[3].mxu1  ;;  %v1222_v57 = vsel %vm1210_vm4, %v3084_v50, -inf }
 0x283   : > { %v1188_v52 = vsel %vm1185_vm5, %v1070_v51, -1e+30 }
 0x284   : > { %v1214_v53 = vsel %vm1210_vm4, %v1188_v52, -inf }
 0x285   : > { %v1215_v54 = vmax.f32 %v1213_v49, %v1214_v53  ;;  %v2334_v47 = vpop.f32.mrb[4].mxu1 }
 0x286   : > { %v1191_v55 = vsel %vm1185_vm5, %v2334_v47, -1e+30  ;;  %v1080_v56 = vpop.f32.mrb[5].mxu1 }
 0x287   : > { %v1216_v58 = vrot.slane %v1215_v54, 4  ;;  %v1223_v59 = vsel %vm1210_vm4, %v1080_v56, -inf  ;;  %v1225_v61 = vsel %vm1210_vm4, %v1191_v55, -inf }
 0x288   : > { %v1224_v60 = vmax.f32 %v1222_v57, %v1223_v59 }
 0x289   : > { %v1217_v7 = vmax.f32 %v1215_v54, %v1216_v58  ;;  %v3095_v8 = vpop.f32.mrb[6].mxu1 }
 0x28a   : > { %v1226_v62 = vmax.f32 %v1224_v60, %v1225_v61  ;;  %v1234_v63 = vsel %vm1210_vm4, %v3095_v8, -inf  ;;  %v3099_v1 = vpop.f32.mrb[7].mxu1 }
 0x28b   : > { %v1218_v2 = vrot.slane %v1217_v7, 2  ;;  %v1233_v3 = vsel %vm1210_vm4, %v3099_v1, -inf }
 0x28c   : > { %v1227_v4 = vrot.slane %v1226_v62, 4  ;;  %v1235_v5 = vmax.f32 %v1233_v3, %v1234_v63 }
 0x28d   : > { %v1219_v6 = vmax.f32 %v1217_v7, %v1218_v2  ;;  %v3103_v9 = vpop.f32.mrb[8].mxu1 }
 0x28e   : > { %v1228_v10 = vmax.f32 %v1226_v62, %v1227_v4  ;;  %v1100_v12 = vpop.f32.mrb[9].mxu1  ;;  %v1244_v27 = vsel %vm1210_vm4, %v3103_v9, -inf }
 0x28f   : > { %v1220_v13 = vrot.slane %v1219_v6, 1  ;;  %v3107_v14 = vsel %vm1185_vm5, %v1100_v12, -1e+30 }
 0x290   : > { %v1229_v15 = vrot.slane %v1228_v10, 2  ;;  %v1236_v16 = vsel %vm1210_vm4, %v3107_v14, -inf }
 0x291   : > { %v1221_v17 = vmax.f32 %v1219_v6, %v1220_v13  ;;  %v1237_v18 = vmax.f32 %v1235_v5, %v1236_v16  ;;  %v2343_v19 = vpop.f32.mrb[10].mxu1 }
 0x292   : > { %v1230_v20 = vmax.f32 %v1228_v10, %v1229_v15  ;;  %v3111_v21 = vpop.f32.mrb[11].mxu1  ;;  %v3117_v28 = vsel %vm1185_vm5, %v2343_v19, -1e+30 }
 0x293   : > { %v1299_v22 = vsub.f32 %v1060_v46, %v1221_v17  ;;  %v1300_v23 = vsub.f32 %v2328_v44, %v1221_v17  ;;  %v1301_v24 = vsub.f32 %v1188_v52, %v1221_v17  ;;  %v1238_v25 = vrot.slane %v1237_v18, 4 }
 0x294   : > { %v1231_v26 = vrot.slane %v1230_v20, 1  ;;  %v1245_v29 = vsel %vm1210_vm4, %v3111_v21, -inf  ;;  %v1247_v37 = vsel %vm1210_vm4, %v3117_v28, -inf }
 0x295   : > { %v1323_v31 = vmul.f32 1.442695, %v1299_v22  ;;  %v1325_v32 = vmul.f32 1.442695, %v1300_v23  ;;  %v1327_v33 = vmul.f32 1.442695, %v1301_v24  ;;  %v1239_v30 = vmax.f32 %v1237_v18, %v1238_v25 }
 0x296   : > { %v1232_v34 = vmax.f32 %v1230_v20, %v1231_v26  ;;  %v1246_v35 = vmax.f32 %v1244_v27, %v1245_v29  ;;  %v3121_v36 = vpop.f32.mrb[12].mxu1 }
 0x297   : > { %2474 = vpow2.f32 %v1323_v31  ;;  %v1240_v38 = vrot.slane %v1239_v30, 2  ;;  %v1256_v11 = vsel %vm1210_vm4, %v3121_v36, -inf  ;;  %v3127_v39 = vpop.f32.mrb[13].mxu1 }
 0x298   : > { %2476 = vpow2.f32 %v1325_v32  ;;  %v1302_v40 = vsub.f32 %v3084_v50, %v1232_v34  ;;  %v1303_v41 = vsub.f32 %v1080_v56, %v1232_v34  ;;  %v1304_v42 = vsub.f32 %v1191_v55, %v1232_v34 }
 0x299   : > { %2478 = vpow2.f32 %v1327_v33  ;;  %v1241_v44 = vmax.f32 %v1239_v30, %v1240_v38  ;;  %v1248_v45 = vmax.f32 %v1246_v35, %v1247_v37  ;;  %v1255_v46 = vsel %vm1210_vm4, %v3127_v39, -inf  ;;  %v3132_v48 = vpop.f32.mrb[14].mxu1 }
 0x29a   : > { %v1329_v49 = vmul.f32 1.442695, %v1302_v40  ;;  %v1331_v51 = vmul.f32 1.442695, %v1303_v41  ;;  %v1333_v52 = vmul.f32 1.442695, %v1304_v42  ;;  %v1257_v53 = vmax.f32 %v1255_v46, %v1256_v11 }
 0x29b   : > { %v1242_v54 = vrot.slane %v1241_v44, 1  ;;  %v1249_v47 = vrot.slane %v1248_v45, 4  ;;  %v1130_v57 = vpop.f32.mrb[15].mxu1  ;;  %v1266_v4 = vsel %vm1210_vm4, %v3132_v48, -inf }
 0x29c   : > { %2480 = vpow2.f32 %v1329_v49  ;;  %v3136_v50 = vsel %vm1185_vm5, %v1130_v57, -1e+30 }
 0x29d   : > { %2482 = vpow2.f32 %v1331_v51  ;;  %v1243_v55 = vmax.f32 %v1241_v44, %v1242_v54  ;;  %v1250_v56 = vmax.f32 %v1248_v45, %v1249_v47  ;;  %v1258_v58 = vsel %vm1210_vm4, %v3136_v50, -inf  ;;  %v2352_v59 = vpop.f32.mrb[16].mxu1 }
 0x29e   : > { %2484 = vpow2.f32 %v1333_v52  ;;  %v1259_v60 = vmax.f32 %v1257_v53, %v1258_v58  ;;  %v3142_v7 = vsel %vm1185_vm5, %v2352_v59, -1e+30  ;;  %v3144_v61 = vpop.f32.mrb[17].mxu1 }
 0x29f   : > { %v1305_v62 = vsub.f32 %v3099_v1, %v1243_v55  ;;  %v1306_v63 = vsub.f32 %v3095_v8, %v1243_v55  ;;  %v1307_v2 = vsub.f32 %v3107_v14, %v1243_v55  ;;  %v1251_v3 = vrot.slane %v1250_v56, 2 }
 0x2a0   : > { %v1260_v5 = vrot.slane %v1259_v60, 4  ;;  %v1267_v6 = vsel %vm1210_vm4, %v3144_v61, -inf  ;;  %v1269_v14 = vsel %vm1210_vm4, %v3142_v7, -inf }
 0x2a1   : > { %v3153_v10 = vpop.eup %2474  ;;  %v1335_v12 = vmul.f32 1.442695, %v1305_v62  ;;  %v1337_v13 = vmul.f32 1.442695, %v1306_v63  ;;  %v1339_v15 = vmul.f32 1.442695, %v1307_v2  ;;  %v1252_v16 = vmax.f32 %v1250_v56, %v1251_v3 }
 0x2a2   : > { %v3155_v17 = vpop.eup %2476  ;;  %v1371_v8 = vsel %vm1210_vm4, %v3153_v10, 0.0  ;;  %v1261_v1 = vmax.f32 %v1259_v60, %v1260_v5  ;;  %v1268_v18 = vmax.f32 %v1266_v4, %v1267_v6  ;;  %v3161_v19 = vpop.f32.mrb[18].mxu1 }
 0x2a3   : > { %v3163_v20 = vpop.eup %2478  ;;  %v1372_v22 = vsel %vm1210_vm4, %v3155_v17, 0.0  ;;  %2486 = vpow2.f32 %v1335_v12  ;;  %v1253_v23 = vrot.slane %v1252_v16, 1  ;;  %v3169_v24 = vsel %vm1210_vm4, %v3161_v19, -inf  ;;  %v3171_v25 = vpop.f32.mrb[19].mxu1 }
 0x2a4   : > { %v1373_v26 = vadd.f32 %v1372_v22, %v1371_v8  ;;  %v1374_v27 = vsel %vm1210_vm4, %v3163_v20, 0.0  ;;  %2488 = vpow2.f32 %v1337_v13  ;;  %v1262_v29 = vrot.slane %v1261_v1, 2 }
 0x2a5   : > { %2490 = vpow2.f32 %v1339_v15  ;;  %v1254_v31 = vmax.f32 %v1252_v16, %v1253_v23  ;;  %v1270_v32 = vmax.f32 %v1268_v18, %v1269_v14  ;;  %v3177_v33 = vsel %vm1210_vm4, %v3171_v25, -inf  ;;  %v3179_v30 = vpop.f32.mrb[20].mxu1 }
 0x2a6   : > { %v3181_v34 = vpop.eup %2480  ;;  %v1375_v35 = vadd.f32 %v1374_v27, %v1373_v26  ;;  %v1263_v38 = vmax.f32 %v1261_v1, %v1262_v29  ;;  %v1279_v37 = vmax.f32 %v3177_v33, %v3169_v24  ;;  %v3187_v11 = vsel %vm1210_vm4, %v3179_v30, -inf  ;;  %v1160_v40 = vpop.f32.mrb[21].mxu1 }
 0x2a7   : > { %v3189_v41 = vpop.eup %2482  ;;  %v1382_v42 = vsel %vm1210_vm4, %v3181_v34, 0.0  ;;  %v1308_v44 = vsub.f32 %v3103_v9, %v1254_v31  ;;  %v1309_v45 = vsub.f32 %v3111_v21, %v1254_v31  ;;  %v1310_v46 = vsub.f32 %v3117_v28, %v1254_v31 }
 0x2a8   : > { %v3196_v49 = vpop.eup %2484  ;;  %v1376_v51 = vrot.slane %v1375_v35, 4  ;;  %v1383_v52 = vsel %vm1210_vm4, %v3189_v41, 0.0  ;;  %v1264_v53 = vrot.slane %v1263_v38, 1  ;;  %v1271_v54 = vrot.slane %v1270_v32, 4 }
 0x2a9   : > { %v1384_v47 = vadd.f32 %v1383_v52, %v1382_v42  ;;  %v1385_v57 = vsel %vm1210_vm4, %v3196_v49, 0.0  ;;  %v1341_v55 = vmul.f32 1.442695, %v1308_v44  ;;  %v1343_v56 = vmul.f32 1.442695, %v1309_v45  ;;  %v2361_v58 = vpop.f32.mrb[22].mxu1 }
 0x2aa   : > { %v1377_v9 = vadd.f32 %v1376_v51, %v1375_v35  ;;  %v1345_v59 = vmul.f32 1.442695, %v1310_v46  ;;  %v1265_v21 = vmax.f32 %v1263_v38, %v1264_v53  ;;  %v1272_v60 = vmax.f32 %v1270_v32, %v1271_v54  ;;  %v3202_v28 = vpop.f32.mrb[23].mxu1 }
 0x2ab   : > { %v1386_v62 = vadd.f32 %v1385_v57, %v1384_v47  ;;  %2492 = vpow2.f32 %v1341_v55  ;;  %v3206_v63 = vsel %vm1185_vm5, %v1160_v40, -1e+30  ;;  %v3210_v2 = vsel %vm1185_vm5, %v2361_v58, -1e+30 }
 0x2ac   : > { %v1378_v3 = vrot.slane %v1377_v9, 2  ;;  %2494 = vpow2.f32 %v1343_v56  ;;  %v1311_v4 = vsub.f32 %v3127_v39, %v1265_v21  ;;  %v1312_v5 = vsub.f32 %v3121_v36, %v1265_v21 }
 0x2ad   : > { %v3214_v6 = vpop.eup %2486  ;;  %v1387_v12 = vrot.slane %v1386_v62, 4  ;;  %2496 = vpow2.f32 %v1345_v59  ;;  %v1313_v13 = vsub.f32 %v3136_v50, %v1265_v21  ;;  %v1273_v15 = vrot.slane %v1272_v60, 2 }
 0x2ae   : > { %v3217_v16 = vpop.eup %2488  ;;  %v1379_v8 = vadd.f32 %v1378_v3, %v1377_v9  ;;  %v1393_v43 = vsel %vm1210_vm4, %v3214_v6, 0.0  ;;  %v1347_v1 = vmul.f32 1.442695, %v1311_v4  ;;  %v1349_v14 = vmul.f32 1.442695, %v1312_v5 }
 0x2af   : > { %v3221_v18 = vpop.eup %2490  ;;  %v1388_v39 = vadd.f32 %v1387_v12, %v1386_v62  ;;  %v1394_v36 = vsel %vm1210_vm4, %v3217_v16, 0.0  ;;  %v1351_v22 = vmul.f32 1.442695, %v1313_v13  ;;  %v1274_v23 = vmax.f32 %v1272_v60, %v1273_v15 }
 0x2b0   : > { %v1380_v24 = vrot.slane %v1379_v8, 1  ;;  %v1395_v26 = vadd.f32 %v1394_v36, %v1393_v43  ;;  %v1396_v50 = vsel %vm1210_vm4, %v3221_v18, 0.0  ;;  %2498 = vpow2.f32 %v1347_v1 }
 0x2b1   : > { %v1389_v27 = vrot.slane %v1388_v39, 2  ;;  %2500 = vpow2.f32 %v1349_v14  ;;  %v1275_v29 = vrot.slane %v1274_v23, 1  ;;  %v1280_v31 = vsel %vm1210_vm4, %v3206_v63, -inf }
 0x2b2   : > { %v1381_v32 = vadd.f32 %v1380_v24, %v1379_v8  ;;  %v1397_v33 = vadd.f32 %v1396_v50, %v1395_v26  ;;  %2502 = vpow2.f32 %v1351_v22  ;;  %v1281_v35 = vmax.f32 %v1279_v37, %v1280_v31 }
 0x2b3   : > { %v1390_v38 = vadd.f32 %v1389_v27, %v1388_v39  ;;  %v1276_v40 = vmax.f32 %v1274_v23, %v1275_v29  ;;  %v1291_v42 = vsel %vm1210_vm4, %v3210_v2, -inf  ;;  %v1289_v44 = vsel %vm1210_vm4, %v3202_v28, -inf }
 0x2b4   : > { %2504 = vrcp.f32 %v1381_v32  ;;  %v1398_v45 = vrot.slane %v1397_v33, 4  ;;  %v1282_v46 = vrot.slane %v1281_v35, 4  ;;  %v1290_v51 = vmax.f32 %v3187_v11, %v1289_v44 }
 0x2b5   : > { %v3234_v52 = vpop.eup %2492  ;;  %v1391_v53 = vrot.slane %v1390_v38, 1  ;;  %v1314_v54 = vsub.f32 %v3132_v48, %v1276_v40  ;;  %v1315_v37 = vsub.f32 %v3144_v61, %v1276_v40  ;;  %v1316_v47 = vsub.f32 %v3142_v7, %v1276_v40 }
 0x2b6   : > { %v3239_v57 = vpop.eup %2494  ;;  %v1399_v55 = vadd.f32 %v1398_v45, %v1397_v33  ;;  %v1404_v56 = vsel %vm1210_vm4, %v3234_v52, 0.0  ;;  %v1283_v58 = vmax.f32 %v1281_v35, %v1282_v46  ;;  %v1292_v9 = vmax.f32 %v1290_v51, %v1291_v42 }
 0x2b7   : > { %v3243_v59 = vpop.eup %2496  ;;  %v1392_v11 = vadd.f32 %v1391_v53, %v1390_v38  ;;  %v1405_v21 = vsel %vm1210_vm4, %v3239_v57, 0.0  ;;  %v1353_v60 = vmul.f32 1.442695, %v1314_v54  ;;  %v1355_v48 = vmul.f32 1.442695, %v1315_v37 }
 0x2b8   : > { %v1400_v62 = vrot.slane %v1399_v55, 2  ;;  %v1406_v61 = vadd.f32 %v1405_v21, %v1404_v56  ;;  %v1357_v3 = vmul.f32 1.442695, %v1316_v47  ;;  %v1407_v7 = vsel %vm1210_vm4, %v3243_v59, 0.0 }
 0x2b9   : > { %2506 = vrcp.f32 %v1392_v11  ;;  %v1284_v4 = vrot.slane %v1283_v58, 2  ;;  %v1293_v5 = vrot.slane %v1292_v9, 4 }
 0x2ba   : > { %v3249_v12 = vpop.eup %2498  ;;  %v1401_v13 = vadd.f32 %v1400_v62, %v1399_v55  ;;  %v1408_v15 = vadd.f32 %v1407_v7, %v1406_v61  ;;  %2508 = vpow2.f32 %v1353_v60 }
 0x2bb   : > { %v3251_v8 = vpop.eup %2500  ;;  %v1415_v43 = vsel %vm1210_vm4, %v3249_v12, 0.0  ;;  %2510 = vpow2.f32 %v1355_v48  ;;  %v1285_v1 = vmax.f32 %v1283_v58, %v1284_v4  ;;  %v1294_v14 = vmax.f32 %v1292_v9, %v1293_v5 }
 0x2bc   : > { %v3255_v39 = vpop.eup %2502  ;;  %v1402_v36 = vrot.slane %v1401_v13, 1  ;;  %v1409_v22 = vrot.slane %v1408_v15, 4  ;;  %v1416_v23 = vsel %vm1210_vm4, %v3251_v8, 0.0  ;;  %2512 = vpow2.f32 %v1357_v3 }
 0x2bd   : > { %v1417_v24 = vadd.f32 %v1416_v23, %v1415_v43  ;;  %v1286_v26 = vrot.slane %v1285_v1, 1  ;;  %v1295_v50 = vrot.slane %v1294_v14, 2  ;;  %v1418_v32 = vsel %vm1210_vm4, %v3255_v39, 0.0 }
 0x2be   : > { %v2505_v27 = vpop.eup %2504  ;;  %v1403_v29 = vadd.f32 %v1402_v36, %v1401_v13  ;;  %v1410_v31 = vadd.f32 %v1409_v22, %v1408_v15 }
 0x2bf   : > { %v1419_v33 = vadd.f32 %v1418_v32, %v1417_v24  ;;  %v1287_v35 = vmax.f32 %v1285_v1, %v1286_v26  ;;  %v1296_v38 = vmax.f32 %v1294_v14, %v1295_v50  ;;  %v1467_v40 = vmul.f32 %v2505_v27, %v3153_v10 }
 0x2c0   : > { %2514 = vrcp.f32 %v1403_v29  ;;  %v1411_v42 = vrot.slane %v1410_v31, 2  ;;  %v1468_v44 = vmul.f32 %v2505_v27, %v3155_v17  ;;  %v1469_v45 = vmul.f32 %v2505_v27, %v3163_v20 }
 0x2c1   : > { %v1420_v46 = vrot.slane %v1419_v33, 4  ;;  %v1317_v51 = vsub.f32 %v3171_v25, %v1287_v35  ;;  %v1318_v53 = vsub.f32 %v3161_v19, %v1287_v35  ;;  %v1319_v54 = vsub.f32 %v3206_v63, %v1287_v35  ;;  %2364 = vmatprep.mubr.msk.f32.mxu0 %vm1210_vm4, %v1467_v40 }
 0x2c2   : > { %v1412_v37 = vadd.f32 %v1411_v42, %v1410_v31  ;;  %v1297_v47 = vrot.slane %v1296_v38, 1  ;;  %2365 = vmatmul.mubr.msk.f32.vlgmr.msra.gmra.mrb[24].mxu0 %vm1210_vm4, %v1468_v44 }
 0x2c3   : > { %v2507_v10 = vpop.eup %2506  ;;  %v1421_v55 = vadd.f32 %v1420_v46, %v1419_v33  ;;  %v1359_v56 = vmul.f32 1.442695, %v1317_v51  ;;  %v1361_v58 = vmul.f32 1.442695, %v1318_v53  ;;  %v1363_v17 = vmul.f32 1.442695, %v1319_v54  ;;  %2367 = vmatprep.mubr.msk.f32.mxu0 %vm1210_vm4, %v1469_v45 }
 0x2c4   : > { %v3270_v20 = vpop.eup %2508  ;;  %v1413_v25 = vrot.slane %v1412_v37, 1  ;;  %v1298_v9 = vmax.f32 %v1296_v38, %v1297_v47  ;;  %v1470_v19 = vmul.f32 %v2507_v10, %v3181_v34  ;;  %v1471_v63 = vmul.f32 %v2507_v10, %v3189_v41 }
 0x2c5   : > { %v3274_v11 = vpop.eup %2510  ;;  %v1422_v21 = vrot.slane %v1421_v55, 2  ;;  %v1426_v60 = vsel %vm1210_vm4, %v3270_v20, 0.0  ;;  %2516 = vpow2.f32 %v1359_v56  ;;  %v1472_v48 = vmul.f32 %v2507_v10, %v3196_v49 }
 0x2c6   : > { %v3279_v62 = vpop.eup %2512  ;;  %v1414_v61 = vadd.f32 %v1413_v25, %v1412_v37  ;;  %v1427_v3 = vsel %vm1210_vm4, %v3274_v11, 0.0  ;;  %2518 = vpow2.f32 %v1361_v58  ;;  %v1320_v34 = vsub.f32 %v3179_v30, %v1298_v9  ;;  %2368 = vmatmul.mubr.msk.f32.gmra.mrb[26].mxu0 %vm1210_vm4, %v1470_v19 }
 0x2c7   : > { %v1423_v41 = vadd.f32 %v1422_v21, %v1421_v55  ;;  %v1428_v7 = vadd.f32 %v1427_v3, %v1426_v60  ;;  %v1429_v4 = vsel %vm1210_vm4, %v3279_v62, 0.0  ;;  %2520 = vpow2.f32 %v1363_v17  ;;  %2370 = vmatprep.mubr.msk.f32.mxu0 %vm1210_vm4, %v1471_v63 }
 0x2c8   : > { %2522 = vrcp.f32 %v1414_v61  ;;  %v1321_v49 = vsub.f32 %v3202_v28, %v1298_v9  ;;  %v1322_v5 = vsub.f32 %v3210_v2, %v1298_v9  ;;  %v1365_v13 = vmul.f32 1.442695, %v1320_v34 }
 0x2c9   : > { %v1424_v15 = vrot.slane %v1423_v41, 1  ;;  %v1430_v43 = vadd.f32 %v1429_v4, %v1428_v7 }
 0x2ca   : > { %v2515_v1 = vpop.eup %2514  ;;  %2524 = vpow2.f32 %v1365_v13  ;;  %v1367_v30 = vmul.f32 1.442695, %v1321_v49  ;;  %v1369_v14 = vmul.f32 1.442695, %v1322_v5  ;;  %2371 = vmatmul.mubr.msk.f32.gmra.mrb[28].mxu0 %vm1210_vm4, %v1472_v48 }
 0x2cb   : > { %v1425_v36 = vadd.f32 %v1424_v15, %v1423_v41  ;;  %v1431_v22 = vrot.slane %v1430_v43, 4  ;;  %v1473_v23 = vmul.f32 %v2515_v1, %v3214_v6  ;;  %v1474_v24 = vmul.f32 %v2515_v1, %v3217_v16  ;;  %v2472_v15 = vld [vmem:[%s3418_s6] sm:$0xff]  }
 0x2cc   : > { %2526 = vpow2.f32 %v1367_v30  ;;  %v1475_v28 = vmul.f32 %v2515_v1, %v3221_v18  ;;  %v1756_v1 = vpop.permute.xlu1 %1755  ;;  %v1754_v30 = vpop.permute.xlu0 %1753 }
 0x2cd   : > { %2528 = vrcp.f32 %v1425_v36  ;;  %v1432_v2 = vadd.f32 %v1431_v22, %v1430_v43  ;;  %2373 = vmatprep.mubr.msk.f32.mxu0 %vm1210_vm4, %v1473_v23  ;;  %v2473_v43 = vld [vmem:[%s3418_s6 + $0x8] sm:$0xff]  }
 0x2ce   : > { %2530 = vpow2.f32 %v1369_v14  ;;  %2374 = vmatmul.mubr.msk.f32.gmra.mrb[30].mxu0 %vm1210_vm4, %v1474_v24 }
 0x2cf   : > { %v2517_v26 = vpop.eup %2516  ;;  %v1433_v50 = vrot.slane %v1432_v2, 2  ;;  %2376 = vmatprep.mubr.msk.f32.mxu0 %vm1210_vm4, %v1475_v28 }
 0x2d0   : > { %v2519_v27 = vpop.eup %2518  ;;  %v1437_v29 = vsel %vm1210_vm4, %v2517_v26, 0.0  ;;  %v1762_v14 = vpop.permute.xlu1 %1761 }
 0x2d1   : > { %v2521_v6 = vpop.eup %2520  ;;  %v1434_v31 = vadd.f32 %v1433_v50, %v1432_v2  ;;  %v1438_v16 = vsel %vm1210_vm4, %v2519_v27, 0.0  ;;  %v1760_v36 = vpop.permute.xlu0 %1759 }
 0x2d2   : > { %v2523_v32 = vpop.eup %2522  ;;  %v1439_v18 = vadd.f32 %v1438_v16, %v1437_v29  ;;  %v1440_v33 = vsel %vm1210_vm4, %v2521_v6, 0.0 }
 0x2d3   : > { %v1435_v35 = vrot.slane %v1434_v31, 1  ;;  %v1476_v38 = vmul.f32 %v2523_v32, %v3234_v52  ;;  %v1477_v40 = vmul.f32 %v2523_v32, %v3239_v57  ;;  %v1478_v42 = vmul.f32 %v2523_v32, %v3243_v59 }
 0x2d4   : > { %v2525_v44 = vpop.eup %2524  ;;  %v1441_v45 = vadd.f32 %v1440_v33, %v1439_v18  ;;  %v1768_v22 = vpop.permute.xlu1 %1767 }
 0x2d5   : > { %v1436_v46 = vadd.f32 %v1435_v35, %v1434_v31  ;;  %v1448_v51 = vsel %vm1210_vm4, %v2525_v44, 0.0  ;;  %2377 = vmatmul.mubr.msk.f32.gmra.mrb[32].mxu0 %vm1210_vm4, %v1476_v38  ;;  %v1766_v23 = vpop.permute.xlu0 %1765 }
 0x2d6   : > { %v2527_v53 = vpop.eup %2526  ;;  %v1442_v54 = vrot.slane %v1441_v45, 4  ;;  %2379 = vmatprep.mubr.msk.f32.mxu0 %vm1210_vm4, %v1477_v40 }
 0x2d7   : > { %v2529_v37 = vpop.eup %2528  ;;  %2532 = vrcp.f32 %v1436_v46  ;;  %v1449_v47 = vsel %vm1210_vm4, %v2527_v53, 0.0 }
 0x2d8   : > { %v2531_v52 = vpop.eup %2530  ;;  %v1443_v10 = vadd.f32 %v1442_v54, %v1441_v45  ;;  %v1450_v57 = vadd.f32 %v1449_v47, %v1448_v51  ;;  %v1479_v59 = vmul.f32 %v2529_v37, %v3249_v12  ;;  %v1481_v55 = vmul.f32 %v2529_v37, %v3255_v39  ;;  %v1764_v50 = vpop.permute.xlu1 %1763 }
 0x2d9   : > { %v1451_v56 = vsel %vm1210_vm4, %v2531_v52, 0.0  ;;  %2380 = vmatmul.mubr.msk.f32.gmra.mrb[34].mxu0 %vm1210_vm4, %v1478_v42  ;;  %v1480_v58 = vmul.f32 %v2529_v37, %v3251_v8  ;;  %v1758_v29 = vpop.permute.xlu0 %1757 }
 0x2da   : > { %v1444_v17 = vrot.slane %v1443_v10, 2  ;;  %v1452_v25 = vadd.f32 %v1451_v56, %v1450_v57  ;;  %2382 = vmatprep.mubr.msk.f32.mxu0 %vm1210_vm4, %v1479_v59  ;;  %2385 = vmatprep.mubr.msk.f32.mxu1 %vm1210_vm4, %v1481_v55 }
 0x2dc   : > { %v1445_v9 = vadd.f32 %v1444_v17, %v1443_v10  ;;  %v1453_v19 = vrot.slane %v1452_v25, 4  ;;  %v1774_v38 = vpop.permute.xlu1 %1773 }
 0x2dd   : > { %2383 = vmatmul.mubr.msk.f32.gmra.mrb[36].mxu0 %vm1210_vm4, %v1480_v58 }
 0x2de   : > { %v1446_v63 = vrot.slane %v1445_v9, 1  ;;  %v1454_v12 = vadd.f32 %v1453_v19, %v1452_v25 }
 0x2e0   : > { %v1447_v21 = vadd.f32 %v1446_v63, %v1445_v9  ;;  %v1455_v39 = vrot.slane %v1454_v12, 2  ;;  %v1778_v56 = vpop.permute.xlu1 %1777 }
 0x2e1   : > { %v2533_v60 = vpop.eup %2532 }
 0x2e2   : > { %2534 = vrcp.f32 %v1447_v21  ;;  %v1456_v48 = vadd.f32 %v1455_v39, %v1454_v12  ;;  %v1482_v61 = vmul.f32 %v2533_v60, %v3270_v20  ;;  %v1483_v8 = vmul.f32 %v2533_v60, %v3274_v11 }
 0x2e3   : > { %v1484_v3 = vmul.f32 %v2533_v60, %v3279_v62 }
 0x2e4   : > { %v1457_v34 = vrot.slane %v1456_v48, 1  ;;  %2386 = vmatmul.mubr.msk.f32.vlgmr.msra.gmra.mrb[24].mxu1 %vm1210_vm4, %v1482_v61 }
 0x2e5   : > { %2388 = vmatprep.mubr.msk.f32.mxu1 %vm1210_vm4, %v1483_v8  ;;  %2401 = vmatpush3.bf16.msra.mxu1 %v2472_v15  ;;  %v1776_v8 = vpop.permute.xlu1 %1775 }
 0x2e6   : > { %v1458_v41 = vadd.f32 %v1457_v34, %v1456_v48  ;;  %2402 = vmatprep.subr.bf16.mxu1 %v2639_v0 }
 0x2e8   : > { %2536 = vrcp.f32 %v1458_v41  ;;  %2389 = vmatmul.mubr.msk.f32.gmra.mrb[26].mxu1 %vm1210_vm4, %v1484_v3 }
 0x2e9   : > { %2403 = vmatpush3.bf16.msra.mxu1 %v2473_v43 }
 0x2ec   : > { %v2535_v7 = vpop.eup %2534 }
 0x2ed   : > { %v1485_v4 = vmul.f32 %v2535_v7, %v2517_v26  ;;  %v1486_v49 = vmul.f32 %v2535_v7, %v2519_v27  ;;  %v1487_v5 = vmul.f32 %v2535_v7, %v2521_v6 }
 0x2ef   : > { %2391 = vmatprep.mubr.msk.f32.mxu1 %vm1210_vm4, %v1485_v4 }
 0x2f0   : > { %2392 = vmatmul.mubr.msk.f32.gmra.mrb[28].mxu1 %vm1210_vm4, %v1486_v49 }
 0x2f1   : > { %2394 = vmatprep.mubr.msk.f32.mxu1 %vm1210_vm4, %v1487_v5 }
 0x2f2   : > { %v2537_v20 = vpop.eup %2536 }
 0x2f3   : > { %v1488_v11 = vmul.f32 %v2537_v20, %v2525_v44  ;;  %v1489_v62 = vmul.f32 %v2537_v20, %v2527_v53  ;;  %v1490_v13 = vmul.f32 %v2537_v20, %v2531_v52  ;;  %v1772_v44 = vpop.permute.xlu0 %1771 }
 0x2f5   : > { %2395 = vmatmul.mubr.msk.f32.gmra.mrb[30].mxu1 %vm1210_vm4, %v1488_v11 }
 0x2f6   : > { %2397 = vmatprep.mubr.msk.f32.mxu1 %vm1210_vm4, %v1489_v62 }
 0x2f7   : > { %v1770_v9 = vpop.permute.xlu0 %1769 }
 0x2f9   : > { %2398 = vmatmul.mubr.msk.f32.gmra.mrb[32].mxu1 %vm1210_vm4, %v1490_v13 }
 0x2fa   : > { %2404 = vmatprep.mubr.msk.bf16.mxu1 %vm2642_vm6, %v2639_v0 }
 0x2fb   : > { %v1780_v41 = vpop.permute.xlu0 %1779 }
 0x395   : > { %v2366_v24 = vpop.f32.mrb[24].mxu0 }
 0x396   : > { %v1826_v28 = vmul.f32 %v2366_v24, %v1756_v1  ;;  %v1634_v2 = vpop.f32.mrb[25].mxu0 }
 0x397   : > { %v1825_v26 = vmul.f32 %v1754_v30, %v1634_v2  ;;  %v1786_v30 = vpop.permute.xlu1 %1785 }
 0x398   : > { %v1850_v27 = vsel %vm343_vm1, %v1826_v28, 0.0  ;;  %v1784_v28 = vpop.permute.xlu0 %1783 }
 0x399   : > { %v1849_v6 = vsel %vm343_vm1, %v1825_v26, 0.0  ;;  %v2369_v31 = vpop.f32.mrb[26].mxu0 }
 0x39a   : > { %v1851_v16 = vadd.f32 %v1850_v27, %v1849_v6  ;;  %v1644_v32 = vpop.f32.mrb[27].mxu0  ;;  %v1828_v18 = vmul.f32 %v2369_v31, %v1760_v36 }
 0x39b   : > { %v1827_v0 = vmul.f32 %v1758_v29, %v1644_v32 }
 0x39c   : > { %v1860_v53 = vsel %vm343_vm1, %v1828_v18, 0.0 }
 0x39d   : > { %v1852_v33 = vsel %vm343_vm1, %v1827_v0, 0.0  ;;  %v2372_v35 = vpop.f32.mrb[28].mxu0 }
 0x39e   : > { %v1853_v40 = vadd.f32 %v1852_v33, %v1851_v16  ;;  %v1654_v42 = vpop.f32.mrb[29].mxu0  ;;  %v1830_v45 = vmul.f32 %v2372_v35, %v1764_v50 }
 0x39f   : > { %v1829_v46 = vmul.f32 %v1762_v14, %v1654_v42 }
 0x3a0   : > { %v1854_v51 = vrot.slane %v1853_v40, 4  ;;  %v1863_v59 = vsel %vm343_vm1, %v1830_v45, 0.0 }
 0x3a1   : > { %v1861_v54 = vsel %vm343_vm1, %v1829_v46, 0.0  ;;  %v2375_v37 = vpop.f32.mrb[30].mxu0  ;;  %v1782_v46 = vpop.permute.xlu0 %1781 }
 0x3a2   : > { %v1855_v47 = vadd.f32 %v1854_v51, %v1853_v40  ;;  %v1862_v52 = vadd.f32 %v1861_v54, %v1860_v53  ;;  %v1832_v10 = vmul.f32 %v2375_v37, %v1768_v22  ;;  %v1664_v57 = vpop.f32.mrb[31].mxu0 }
 0x3a3   : > { %v1831_v55 = vmul.f32 %v1766_v23, %v1664_v57 }
 0x3a4   : > { %v1856_v58 = vrot.slane %v1855_v47, 2  ;;  %v1864_v17 = vadd.f32 %v1863_v59, %v1862_v52  ;;  %v1872_v25 = vsel %vm343_vm1, %v1832_v10, 0.0 }
 0x3a5   : > { %v1871_v19 = vsel %vm343_vm1, %v1831_v55, 0.0 }
 0x3a6   : > { %v1857_v63 = vadd.f32 %v1856_v58, %v1855_v47  ;;  %v1865_v12 = vrot.slane %v1864_v17, 4  ;;  %v1873_v21 = vadd.f32 %v1872_v25, %v1871_v19  ;;  %v1792_v19 = vpop.permute.xlu0 %1791 }
 0x3a8   : > { %v1858_v39 = vrot.slane %v1857_v63, 1  ;;  %v1866_v60 = vadd.f32 %v1865_v12, %v1864_v17  ;;  %v2378_v48 = vpop.f32.mrb[32].mxu0 }
 0x3a9   : > { %v1674_v61 = vpop.f32.mrb[33].mxu0  ;;  %v1834_v49 = vmul.f32 %v2378_v48, %v1772_v44  ;;  %v1790_v44 = vpop.permute.xlu1 %1789 }
 0x3aa   : > { %v1867_v3 = vrot.slane %v1866_v60, 2  ;;  %v1833_v34 = vmul.f32 %v1770_v9, %v1674_v61  ;;  %v1859_v7 = vadd.f32 %v1858_v39, %v1857_v63 }
 0x3ab   : > { %v1882_v22 = vsel %vm343_vm1, %v1834_v49, 0.0 }
 0x3ac   : > { %v1868_v4 = vadd.f32 %v1867_v3, %v1866_v60  ;;  %v1874_v5 = vsel %vm343_vm1, %v1833_v34, 0.0  ;;  %v2381_v20 = vpop.f32.mrb[34].mxu0  ;;  %v1937_v14 = vpack.c.bf16 %v1859_v7, %v1859_v7 }
 0x3ad   : > { %v1875_v11 = vadd.f32 %v1874_v5, %v1873_v21  ;;  %v1684_v62 = vpop.f32.mrb[35].mxu0  ;;  %v1836_v15 = vmul.f32 %v2381_v20, %v1776_v8  ;;  %v1788_v17 = vpop.permute.xlu1 %1787 }
 0x3ae   : > { %v1869_v13 = vrot.slane %v1868_v4, 1  ;;  %v1835_v43 = vmul.f32 %v1774_v38, %v1684_v62  ;;  %v1964_v18 = vunpack.c.l.b16 %v1937_v14  ;;  %v1796_v20 = vpop.permute.xlu0 %1795 }
 0x3af   : > { %v1876_v1 = vrot.slane %v1875_v11, 4  ;;  %v1885_v6 = vsel %vm343_vm1, %v1836_v15, 0.0 }
 0x3b0   : > { %v1870_v36 = vadd.f32 %v1869_v13, %v1868_v4  ;;  %v1883_v23 = vsel %vm343_vm1, %v1835_v43, 0.0  ;;  %v2384_v24 = vpop.f32.mrb[36].mxu0 }
 0x3b1   : > { %v1877_v2 = vadd.f32 %v1876_v1, %v1875_v11  ;;  %v1884_v26 = vadd.f32 %v1883_v23, %v1882_v22  ;;  %v1838_v50 = vmul.f32 %v2384_v24, %v1780_v41  ;;  %v1694_v27 = vpop.f32.mrb[37].mxu0  ;;  %v1798_v24 = vpop.permute.xlu1 %1797 }
 0x3b2   : > { %v1938_v29 = vpack.c.bf16 %v1870_v36, %v1870_v36  ;;  %v1837_v31 = vmul.f32 %v1778_v56, %v1694_v27 }
 0x3b3   : > { %v1878_v16 = vrot.slane %v1877_v2, 2  ;;  %v1886_v32 = vadd.f32 %v1885_v6, %v1884_v26  ;;  %v1894_v0 = vsel %vm343_vm1, %v1838_v50, 0.0 }
 0x3b4   : > { %v1965_v33 = vunpack.c.l.b16 %v1938_v29  ;;  %v1893_v35 = vsel %vm343_vm1, %v1837_v31, 0.0  ;;  %v1794_v29 = vpop.permute.xlu0 %1793 }
 0x3b5   : > { %v1879_v38 = vadd.f32 %v1878_v16, %v1877_v2  ;;  %v1887_v40 = vrot.slane %v1886_v32, 4  ;;  %v1895_v42 = vadd.f32 %v1894_v0, %v1893_v35 }
 0x3b6   : > { %v1973_v45 = vsel %vm1972_vm7, %v1965_v33, %v1964_v18 }
 0x3b7   : > { %v1880_v51 = vrot.slane %v1879_v38, 1  ;;  %v1888_v53 = vadd.f32 %v1887_v40, %v1886_v32  ;;  %v2387_v54 = vpop.f32.mrb[24].mxu1  ;;  %v1800_v40 = vpop.permute.xlu1 %1799 }
 0x3b8   : > { %v1704_v37 = vpop.f32.mrb[25].mxu1  ;;  %v1840_v55 = vmul.f32 %v2387_v54, %v1784_v28 }
 0x3b9   : > { %v1881_v47 = vadd.f32 %v1880_v51, %v1879_v38  ;;  %v1889_v52 = vrot.slane %v1888_v53, 2  ;;  %v1839_v10 = vmul.f32 %v1782_v46, %v1704_v37 }
 0x3ba   : > { %v1904_v8 = vsel %vm343_vm1, %v1840_v55, 0.0 }
 0x3bb   : > { %v1939_v57 = vpack.c.bf16 %v1881_v47, %v1881_v47  ;;  %v1890_v59 = vadd.f32 %v1889_v52, %v1888_v53  ;;  %v1896_v56 = vsel %vm343_vm1, %v1839_v10, 0.0  ;;  %v2390_v58 = vpop.f32.mrb[26].mxu1 }
 0x3bc   : > { %v1897_v25 = vadd.f32 %v1896_v56, %v1895_v42  ;;  %v1714_v9 = vpop.f32.mrb[27].mxu1  ;;  %v1842_v21 = vmul.f32 %v2390_v58, %v1788_v17 }
 0x3bd   : > { %v1966_v63 = vunpack.c.l.b16 %v1939_v57  ;;  %v1891_v12 = vrot.slane %v1890_v59, 1  ;;  %v1841_v39 = vmul.f32 %v1786_v30, %v1714_v9 }
 0x3be   : > { %v1898_v60 = vrot.slane %v1897_v25, 4  ;;  %v1907_v4 = vsel %vm343_vm1, %v1842_v21, 0.0 }
 0x3bf   : > { %v1975_v48 = vsel %vm1974_vm8, %v1966_v63, %v1973_v45  ;;  %v1892_v61 = vadd.f32 %v1891_v12, %v1890_v59  ;;  %v1905_v3 = vsel %vm343_vm1, %v1841_v39, 0.0 }
 0x3c0   : > { %v1899_v34 = vadd.f32 %v1898_v60, %v1897_v25  ;;  %v1906_v41 = vadd.f32 %v1905_v3, %v1904_v8 }
 0x3c1   : > { %v1940_v7 = vpack.c.bf16 %v1892_v61, %v1892_v61 }
 0x3c2   : > { %v1900_v49 = vrot.slane %v1899_v34, 2  ;;  %v1908_v5 = vadd.f32 %v1907_v4, %v1906_v41 }
 0x3c3   : > { %v1967_v11 = vunpack.c.l.b16 %v1940_v7  ;;  %v2393_v62 = vpop.f32.mrb[28].mxu1 }
 0x3c4   : > { %v1901_v13 = vadd.f32 %v1900_v49, %v1899_v34  ;;  %v1909_v15 = vrot.slane %v1908_v5, 4  ;;  %v1844_v43 = vmul.f32 %v2393_v62, %v1792_v19  ;;  %v1724_v1 = vpop.f32.mrb[29].mxu1  ;;  %v2206_v49 = vld [vmem:[%s3419_s7] ss:$0 sm:$0xff] }
 0x3c5   : > { %v1977_v30 = vsel %vm1976_vm9, %v1967_v11, %v1975_v48  ;;  %v1843_v14 = vmul.f32 %v1790_v44, %v1724_v1 }
 0x3c6   : > { %v1902_v36 = vrot.slane %v1901_v13, 1  ;;  %v1910_v22 = vadd.f32 %v1909_v15, %v1908_v5  ;;  %v1916_v23 = vsel %vm343_vm1, %v1844_v43, 0.0 }
 0x3c7   : > { %v1915_v28 = vsel %vm343_vm1, %v1843_v14, 0.0 }
 0x3c8   : > { %v1903_v2 = vadd.f32 %v1902_v36, %v1901_v13  ;;  %v1911_v26 = vrot.slane %v1910_v22, 2  ;;  %v1917_v50 = vadd.f32 %v1916_v23, %v1915_v28  ;;  %v2396_v27 = vpop.f32.mrb[30].mxu1 }
 0x3c9   : > { %v1734_v6 = vpop.f32.mrb[31].mxu1  ;;  %v1846_v33 = vmul.f32 %v2396_v27, %v1796_v20 }
 0x3ca   : > { %v1941_v31 = vpack.c.bf16 %v1903_v2, %v1903_v2  ;;  %v1912_v16 = vadd.f32 %v1911_v26, %v1910_v22  ;;  %v1845_v32 = vmul.f32 %v1794_v29, %v1734_v6 }
 0x3cb   : > { %v1926_v47 = vsel %vm343_vm1, %v1846_v33, 0.0 }
 0x3cc   : > { %v1968_v0 = vunpack.c.l.b16 %v1941_v31  ;;  %v1913_v18 = vrot.slane %v1912_v16, 1  ;;  %v1918_v35 = vsel %vm343_vm1, %v1845_v32, 0.0  ;;  %v2399_v38 = vpop.f32.mrb[32].mxu1 }
 0x3cd   : > { %v1919_v42 = vadd.f32 %v1918_v35, %v1917_v50  ;;  %v1744_v44 = vpop.f32.mrb[33].mxu1  ;;  %v1848_v51 = vmul.f32 %v2399_v38, %v1800_v40 }
 0x3ce   : > { %v1979_v45 = vsel %vm1978_vm10, %v1968_v0, %v1977_v30  ;;  %v1914_v46 = vadd.f32 %v1913_v18, %v1912_v16  ;;  %v1847_v53 = vmul.f32 %v1798_v24, %v1744_v44 }
 0x3cf   : > { %v1920_v54 = vrot.slane %v1919_v42, 4  ;;  %v1929_v55 = vsel %vm343_vm1, %v1848_v51, 0.0 }
 0x3d0   : > { %v1942_v37 = vpack.c.bf16 %v1914_v46, %v1914_v46  ;;  %v1927_v52 = vsel %vm343_vm1, %v1847_v53, 0.0 }
 0x3d1   : > { %v1921_v10 = vadd.f32 %v1920_v54, %v1919_v42  ;;  %v1928_v57 = vadd.f32 %v1927_v52, %v1926_v47 }
 0x3d2   : > { %v1969_v59 = vunpack.c.l.b16 %v1942_v37 }
 0x3d3   : > { %v1922_v56 = vrot.slane %v1921_v10, 2  ;;  %v1930_v58 = vadd.f32 %v1929_v55, %v1928_v57 }
 0x3d4   : > { %v1981_v17 = vsel %vm1980_vm11, %v1969_v59, %v1979_v45 }
 0x3d5   : > { %v1923_v25 = vadd.f32 %v1922_v56, %v1921_v10  ;;  %v1931_v9 = vrot.slane %v1930_v58, 4 }
 0x3d7   : > { %v1924_v19 = vrot.slane %v1923_v25, 1  ;;  %v1932_v63 = vadd.f32 %v1931_v9, %v1930_v58 }
 0x3d9   : > { %v1925_v12 = vadd.f32 %v1924_v19, %v1923_v25  ;;  %v1933_v21 = vrot.slane %v1932_v63, 2 }
 0x3db   : > { %v1943_v39 = vpack.c.bf16 %v1925_v12, %v1925_v12  ;;  %v1934_v60 = vadd.f32 %v1933_v21, %v1932_v63 }
 0x3dd   : > { %v1970_v48 = vunpack.c.l.b16 %v1943_v39  ;;  %v1935_v61 = vrot.slane %v1934_v60, 1 }
 0x3df   : > { %v1983_v8 = vsel %vm1982_vm12, %v1970_v48, %v1981_v17  ;;  %v1936_v3 = vadd.f32 %v1935_v61, %v1934_v60 }
 0x3e1   : > { %v1944_v34 = vpack.c.bf16 %v1936_v3, %v1936_v3 }
 0x3e3   : > { %v1971_v41 = vunpack.c.l.b16 %v1944_v34 }
 0x3e5   : > { %v1985_v7 = vsel %vm1984_vm13, %v1971_v41, %v1983_v8 }
 0x3e6   : > { %v1986_v4 = vpack.c.b16 %v1985_v7, %v1985_v7 }
 0x3e8   : > { %2405 = vmatmul.mubr.msk.bf16.vlgmr.msra.gmra.mrb[36].mxu1 %vm343_vm1, %v1986_v4 }
 0x4bb   : > { %v2036_v5 = vpop.f32.mrb[36].mxu1 }
 0x4bc   : > { %v2037_v20 = vadd.f32 %v2206_v49, %v2036_v5  ;;  %v2406_v11 = vpop.f32.mrb[37].mxu1 }
 0x4bd   : > { %v2039_v62 = vpop.f32.mrb[38].mxu1 }
 0x4be   : > { %v2407_v13 = vpop.f32.mrb[39].mxu1  ;;  %2043 = vst.msk [vmem:[%s324_s21] sm:$0xff] %vm2042_vm14, %v2037_v20 }
 0x4bf   : > { %2581 = shalt.err (!%p2578_p2)
}
 0x4c0   : > { %s2582_s22 = scalar_lea.hbm %s3368_s16, 128  ;;  %s2586_s13 = scalar_lea.hbm %s3420_s8, 256 }
 0x4c1   : > { %p2583_p4 = scmp.ne.s32.totalorder %s3368_s16, %s2582_s22  ;;  %p2587_p9 = scmp.lt.u32.totalorder %s3368_s16, %s3420_s8 }
 0x4c2   : > { %p2588_p1 = scmp.lt.u32.totalorder %s2586_s13, %s2582_s22  ;;  %p2590_p6 = scmp.lt.u32.totalorder %s2582_s22, %s3368_s16 }
 0x4c3   : > { %p2584_p5 = pnand %p2583_p4, %p3427_p11 }
 0x4c4   : > { %p2589_p3 = por %p2588_p1, %p2587_p9 }
 0x4c5   : > { %p2585_p7 = pneg %p2584_p5 }
 0x4c6   : > { %p2591_p12 = por %p2590_p6, %p2589_p3 }
 0x4c8   : > { %p2592_p13 = pnand %p2591_p12, %p2585_p7 }
 0x4ca   : > { %2595 = shalt.err (!%p2592_p13)
}
 0x4cb   : > { %2420 = dma.vmem_to_hbm [thread:$0]  (%p3427_p11), %s3370_s23, 128, %s3368_s16, %s2045_s9  }
 0x4cc PF: > { %s2070_s25 = sand.u32 1, %s2622_s27   ;;  %p3428_p8 = scmp.ne.s32.totalorder %s3425_s18, 0 }
 0x4cd   : > { %p3429_p10 = scmp.ge.s32.totalorder %s2634_s30, 2  ;;  %s2071_s24 = scalar_lea.sflag [#allocation5], %s2070_s25 }
 0x4cf   : > { %p2427_p0 = pnand %p3429_p10, %p3428_p8 }
 0x4d1   : > { %2617 = dma.done.wait (!%p2427_p0), %s2071_s24, 128  }
 0x4d2   : > { %2619 = vsyncadd (!%p2427_p0), %s2071_s24, 4294967168  ;;  %p21_p2 = scmp.ge.s32.totalorder %s2714_s11, 4   ;;  %s3430_s27 = smov %s2626_s28 }
 0x4d3   : > { %s3431_s28 = smov %s2630_s29  ;;  %s3432_s29 = smov %s2726_s14 }
 0x4d4   : > { %s3433_s30 = smov %s2714_s11  ;;  %23 = sbr.rel (!%p21_p2) target bundleno = 5 (0x5), region = 97 }
 0x4db   :  { %2076 = vsyncpa [#allocation4], 1 }
 0x4dc   :  { %2078 = vsyncpa [#allocation4 + $0x1], 1 }
 0x4dd   :  { %2079 = vsyncpa [#allocation5], 1 }
 0x4de   :  { %2081 = vsyncpa [#allocation5 + $0x1], 1 }

</bundles_post_ra>
